<compile_context>
chip_gen: v7x
topology: tpu7x:2x2x1
jax: 0.10.0
libtpu: 0.0.40
codegen_flags: <defaults>
</compile_context>

<pallas_src>
import math

import numpy as np
import jax
import jax.numpy as jnp
from jax.experimental import pallas as pl
from jax.experimental.pallas import tpu as pltpu


_VMEM_LIMIT = 32 * 1024 * 1024        # scoped-VMEM cap; safe on v5e/v6e/v7x (64 MiB phys)
_GROUP_BYTE_BUDGET = 8 * 1024 * 1024  # per-grid-step working-set budget (double-buffered)


def _pick_group(n_slabs, bytes_per_slab):
    """Largest divisor G of n_slabs such that (a) >= 2 grid steps remain
    (keeps both v7x TensorCores fed) and (b) the per-step working set stays
    within a conservative VMEM budget."""
    g = 1
    for cand in range(1, n_slabs + 1):
        if (n_slabs % cand == 0 and n_slabs // cand >= 2
                and cand * bytes_per_slab <= _GROUP_BYTE_BUDGET):
            g = cand
    return g


# ----------------------------------------------------------------------------
# Pallas kernels
# ----------------------------------------------------------------------------
def _decode_kernel(raw_ref, gxy_ref, awh_ref, pred_ref):
    """Decode G (batch, anchor) slabs.

    raw_ref  : [G, rb, fsq]  first rb (>=4) channels of the raw head output
    gxy_ref  : [2, fsq]      per-cell grid x / grid y tables (shared)
    awh_ref  : [G, 2, 1]     per-slab anchor (w, h)
    pred_ref : [G, 4, fsq]   decoded box rows (cx, cy, w, h)
    """
    raw = raw_ref[...]
    gxy = gxy_ref[...]
    awh = awh_ref[...]
    pred_ref[:, 0:2, :] = jax.nn.sigmoid(raw[:, 0:2, :]) + gxy[None, :, :]
    pred_ref[:, 2:4, :] = jnp.exp(raw[:, 2:4, :]) * awh


def _decode_call(raw3, gxy, awh3):
    BA, n_ch, fsq = raw3.shape
    rb = 8 if n_ch >= 8 else n_ch   # only channels 0..3 needed; 8-row block is aligned
    bytes_per_slab = (rb + 4) * fsq * 4 * 2
    G = _pick_group(BA, bytes_per_slab)
    return pl.pallas_call(
        _decode_kernel,
        grid=(BA // G,),
        out_shape=jax.ShapeDtypeStruct((BA, 4, fsq), jnp.float32),
        in_specs=[
            pl.BlockSpec((G, rb, fsq), lambda i: (i, 0, 0)),
            pl.BlockSpec((2, fsq), lambda i: (0, 0)),
            pl.BlockSpec((G, 2, 1), lambda i: (i, 0, 0)),
        ],
        out_specs=pl.BlockSpec((G, 4, fsq), lambda i: (i, 0, 0)),
        compiler_params=pltpu.CompilerParams(
            dimension_semantics=("parallel",),
            vmem_limit_bytes=_VMEM_LIMIT),
    )(raw3, gxy, awh3)


def _obj_loss_kernel(raw_ref, om_ref, tm_ref, out_ref):
    """Dense objectness loss for G slabs: fused sigmoid + BCE + L2 partials.

    raw_ref : [G, 1, fsq]  raw objectness channel (channel 4)
    om_ref  : [G, 1, fsq]  obj_mask
    tm_ref  : [G, 1, fsq]  tgt_mask (== objectness target)
    out_ref : [1, 1, 128]  lane-dense partial sums (lane0 = BCE, lane1 = L2)
    """
    x = raw_ref[...]
    om = om_ref[...]
    tm = tm_ref[...]
    o = jax.nn.sigmoid(x) * om
    t = tm * om
    # torch F.binary_cross_entropy semantics: log terms clamped at -100.
    # TODO(synk): a shared-exp softplus (logits) form would cut EUP ops further
    # but diverges from torch's -100 clamp for saturated logits; keep parity.
    log_p = jnp.maximum(jnp.log(o), -100.0)
    log_1p = jnp.maximum(jnp.log(1.0 - o), -100.0)
    l_obj = jnp.sum(-(t * log_p + (1.0 - t) * log_1p))
    l_l2 = jnp.sum((o - t) ** 2)
    lane = jax.lax.broadcasted_iota(jnp.int32, (1, 128), 1)
    out_ref[0] = jnp.where(lane == 0, l_obj, jnp.where(lane == 1, l_l2, 0.0))


def _obj_loss_call(raw_obj3, om3, tm3):
    BA, _, fsq = raw_obj3.shape
    bytes_per_slab = 3 * fsq * 4 * 2
    G = _pick_group(BA, bytes_per_slab)
    steps = BA // G
    partials = pl.pallas_call(
        _obj_loss_kernel,
        grid=(steps,),
        out_shape=jax.ShapeDtypeStruct((steps, 1, 128), jnp.float32),
        in_specs=[
            pl.BlockSpec((G, 1, fsq), lambda i: (i, 0, 0)),
            pl.BlockSpec((G, 1, fsq), lambda i: (i, 0, 0)),
            pl.BlockSpec((G, 1, fsq), lambda i: (i, 0, 0)),
        ],
        out_specs=pl.BlockSpec((1, 1, 128), lambda i: (i, 0, 0)),
        compiler_params=pltpu.CompilerParams(
            dimension_semantics=("parallel",),   # per-step partials -> both TCs on v7x
            vmem_limit_bytes=_VMEM_LIMIT),
    )(raw_obj3, om3, tm3)
    sums = jnp.sum(partials, axis=(0, 1))        # (128,) tiny reduction in JAX
    return sums[0], sums[1]


# ----------------------------------------------------------------------------
# Sparse matched-cell loss (xy / wh / cls / non-obj l2): <= B*L cells per scale
# ----------------------------------------------------------------------------
def _sparse_matched_loss(raw3, ba, cell, sel, tvec, sscale):
    """Loss terms that are multiplied by tgt_mask (nonzero at matched cells only).

    Tiny data-dependent gather -> plain JAX; no dense target tensor is built."""
    BA, n_ch, fsq = raw3.shape
    m = sel.astype(jnp.float32)[:, None]                     # (N, 1)
    ba_s = jnp.clip(ba, 0, BA - 1)
    cell_s = jnp.clip(cell, 0, fsq - 1)
    raw_g = raw3[ba_s, :, cell_s]                            # (N, n_ch) gather
    sig = jax.nn.sigmoid(raw_g)
    sc = sscale[:, None]

    def bce(o, t):
        lp = jnp.maximum(jnp.log(o), -100.0)
        l1p = jnp.maximum(jnp.log(1.0 - o), -100.0)
        return -(t * lp + (1.0 - t) * l1p)

    d_xy = (sig[:, 0:2] - tvec[:, 0:2]) * m
    d_wh = (raw_g[:, 2:4] - tvec[:, 2:4]) * sc * m
    d_cl = (sig[:, 5:] - tvec[:, 5:]) * m

    l_xy = jnp.sum(bce(sig[:, 0:2], tvec[:, 0:2]) * (sc * sc) * m)
    l_wh = 0.5 * jnp.sum(d_wh * d_wh)
    l_cl = jnp.sum(bce(sig[:, 5:], tvec[:, 5:]) * m)
    l_l2 = jnp.sum(d_xy * d_xy) + jnp.sum(d_wh * d_wh) + jnp.sum(d_cl * d_cl)
    return l_xy, l_wh, l_cl, l_l2


# ----------------------------------------------------------------------------
# Plain-JAX glue: IoU helpers + build_target (data-dependent matching)
# ----------------------------------------------------------------------------
def _bboxes_ciou_xyxy(a, b):
    """CIoU, xyxy boxes.  a: [N,4], b: [K,4] -> [N,K]."""
    tl = jnp.maximum(a[:, None, :2], b[None, :, :2])
    br = jnp.minimum(a[:, None, 2:], b[None, :, 2:])
    con_tl = jnp.minimum(a[:, None, :2], b[None, :, :2])
    con_br = jnp.maximum(a[:, None, 2:], b[None, :, 2:])
    rho2 = ((a[:, None, 0] + a[:, None, 2]) - (b[None, :, 0] + b[None, :, 2])) ** 2 / 4 \
         + ((a[:, None, 1] + a[:, None, 3]) - (b[None, :, 1] + b[None, :, 3])) ** 2 / 4
    w1 = a[:, 2] - a[:, 0]
    h1 = a[:, 3] - a[:, 1]
    w2 = b[:, 2] - b[:, 0]
    h2 = b[:, 3] - b[:, 1]
    area_a = jnp.prod(a[:, 2:] - a[:, :2], axis=1)
    area_b = jnp.prod(b[:, 2:] - b[:, :2], axis=1)
    en = jnp.prod((tl < br).astype(a.dtype), axis=2)
    area_i = jnp.prod(br - tl, axis=2) * en
    area_u = area_a[:, None] + area_b[None, :] - area_i
    iou = area_i / area_u
    c2 = jnp.sum((con_br - con_tl) ** 2, axis=2) + 1e-16
    v = 4.0 / (math.pi ** 2) * (jnp.arctan(w1 / h1)[:, None] - jnp.arctan(w2 / h2)[None, :]) ** 2
    alpha = v / (1.0 - iou + v)
    return iou - (rho2 / c2 + v * alpha)


def _iou_cxcywh(px, py, pw, ph, tx, ty, tw, th):
    """IoU between channel-major predicted boxes and truth boxes.

    p*: [B, Np] (cx, cy, w, h),  t*: [B, L]  ->  [B, Np, L]
    """
    px1 = (px - pw * 0.5)[:, :, None]
    px2 = (px + pw * 0.5)[:, :, None]
    py1 = (py - ph * 0.5)[:, :, None]
    py2 = (py + ph * 0.5)[:, :, None]
    tx1 = (tx - tw * 0.5)[:, None, :]
    tx2 = (tx + tw * 0.5)[:, None, :]
    ty1 = (ty - th * 0.5)[:, None, :]
    ty2 = (ty + th * 0.5)[:, None, :]
    ix1 = jnp.maximum(px1, tx1)
    iy1 = jnp.maximum(py1, ty1)
    ix2 = jnp.minimum(px2, tx2)
    iy2 = jnp.minimum(py2, ty2)
    en = ((ix1 < ix2) & (iy1 < iy2)).astype(px.dtype)
    area_i = (ix2 - ix1) * (iy2 - iy1) * en
    area_p = (pw * ph)[:, :, None]
    area_t = (tw * th)[:, None, :]
    return area_i / (area_p + area_t - area_i)


class YoloLossPallas:
    """JAX/Pallas re-implementation of Yolo_loss.forward."""

    def __init__(self, n_classes=80, n_anchors=3, batch=2, image_size=608):
        self.strides = [8, 16, 32]
        self.n_classes = n_classes
        self.n_anchors = n_anchors
        self.anchors = [[12, 16], [19, 36], [40, 28], [36, 75], [76, 55],
                        [72, 146], [142, 110], [192, 243], [459, 401]]
        self.anch_masks = [[0, 1, 2], [3, 4, 5], [6, 7, 8]]
        self.ignore_thre = 0.5
        self.image_size = image_size   # 608 in the reference; parameterized for tests
        self.batch = batch

        self.masked_anchors, self.ref_anchors, self.grid_xy = [], [], []
        for i in range(3):
            all_anchors_grid = np.array(
                [(w / self.strides[i], h / self.strides[i]) for w, h in self.anchors],
                dtype=np.float32)
            masked = all_anchors_grid[self.anch_masks[i]]
            ref = np.zeros((len(all_anchors_grid), 4), dtype=np.float32)
            ref[:, 2:] = all_anchors_grid
            fsize = image_size // self.strides[i]
            idx = np.arange(fsize * fsize)
            gxy = np.stack([(idx % fsize).astype(np.float32),
                            (idx // fsize).astype(np.float32)], axis=0)   # (2, fsq)
            self.masked_anchors.append(jnp.asarray(masked))
            self.ref_anchors.append(jnp.asarray(ref))
            self.grid_xy.append(jnp.asarray(gxy))

        self._jit_forward = jax.jit(self._forward)

    # --- build_target: kept in plain JAX (data-dependent argmax / dedup) -----
    # TODO(synk): CIoU anchor matching + argmax + per-label dedup has no clean
    # Pallas equivalent; it is O(B*L) scalar-ish work done with batched JAX ops.
    def _build_target(self, pred4, labels, oid, fsize, n_ch, B):
        A = self.n_anchors
        L = labels.shape[1]
        stride = self.strides[oid]
        fsq = fsize * fsize

        nlabel = jnp.sum((jnp.sum(labels, axis=2) > 0).astype(jnp.int32), axis=1)   # [B]
        tx = (labels[:, :, 2] + labels[:, :, 0]) / (stride * 2)                      # [B,L]
        ty = (labels[:, :, 3] + labels[:, :, 1]) / (stride * 2)
        tw = (labels[:, :, 2] - labels[:, :, 0]) / stride
        th = (labels[:, :, 3] - labels[:, :, 1]) / stride
        ti = tx.astype(jnp.int32)    # truncation == torch .to(int16) for non-negative
        tj = ty.astype(jnp.int32)
        valid = jnp.arange(L)[None, :] < nlabel[:, None]                              # [B,L]

        # anchor matching (CIoU of (0,0,w,h) truth boxes vs reference anchors).
        # Padded rows get w=h=1 so the CIoU matrix stays NaN-free; they are
        # dropped via `sel` anyway.
        tw_c = jnp.where(valid, tw, 1.0)
        th_c = jnp.where(valid, th, 1.0)
        zeros = jnp.zeros_like(tw)
        truth_wh = jnp.stack([zeros, zeros, tw_c, th_c], axis=-1)                     # [B,L,4]
        ref = self.ref_anchors[oid]
        ciou = jax.vmap(lambda t: _bboxes_ciou_xyxy(t, ref))(truth_wh)                # [B,L,9]
        best_n_all = jnp.argmax(ciou, axis=2)
        best_n = best_n_all % 3
        am = self.anch_masks[oid]
        best_n_mask = (best_n_all == am[0]) | (best_n_all == am[1]) | (best_n_all == am[2])

        # ignore mask from pred-vs-truth IoU (channel-major pred)
        px = pred4[:, 0, :].reshape(B, A * fsq)
        py = pred4[:, 1, :].reshape(B, A * fsq)
        pw = pred4[:, 2, :].reshape(B, A * fsq)
        ph = pred4[:, 3, :].reshape(B, A * fsq)
        ious = _iou_cxcywh(px, py, pw, ph, tx, ty, tw, th)                            # [B,Np,L]
        ious = jnp.where(valid[:, None, :], ious, 0.0)
        pred_best = jnp.max(ious, axis=2)                                             # [B,Np]
        ignore = pred_best > self.ignore_thre
        has_match = jnp.any(valid & best_n_mask, axis=1)                              # [B]

        # torch: obj_mask[b] = ~pred_best only when the batch has an anchor match
        obj = jnp.where(has_match[:, None],
                        1.0 - ignore.astype(jnp.float32),
                        jnp.ones((B, A * fsq), jnp.float32)).reshape(B * A, fsq)

        sel = valid & best_n_mask                                                     # [B,L]
        # deterministic torch last-write-wins: drop a label if a LATER matched
        # label in the same image targets the same (anchor, cell)
        cell2d = tj * fsize + ti                                                      # [B,L]
        key = best_n * fsq + cell2d
        t_idx = jnp.arange(L)
        later = t_idx[None, None, :] > t_idx[None, :, None]                           # [1,L,L]
        superseded = jnp.any((key[:, :, None] == key[:, None, :]) & later
                             & sel[:, None, :], axis=2)                               # [B,L]
        sel = sel & ~superseded

        ba = (jnp.arange(B)[:, None] * A + best_n)                                    # [B,L]
        ba_oob = jnp.where(sel, ba, B * A).reshape(B * L)   # invalid -> OOB, dropped
        cell = cell2d.reshape(B * L)

        ma = self.masked_anchors[oid]
        cls = labels[:, :, 4].astype(jnp.int32)
        tvec = jnp.concatenate([
            (tx - ti.astype(jnp.float32))[..., None],
            (ty - tj.astype(jnp.float32))[..., None],
            jnp.log(tw / ma[best_n, 0] + 1e-16)[..., None],
            jnp.log(th / ma[best_n, 1] + 1e-16)[..., None],
            jnp.ones((B, L, 1), jnp.float32),
            jax.nn.one_hot(cls, self.n_classes, dtype=jnp.float32),
        ], axis=-1).reshape(B * L, n_ch)
        sscale = jnp.sqrt(2.0 - tw * th / fsize / fsize).reshape(B * L)

        # Only single-channel dense masks are scattered (the dense n_ch-channel
        # target / tgt_scale scatters of the previous version are gone).
        obj = obj.at[ba_oob, cell].set(1.0, mode="drop")
        tm = jnp.zeros((B * A, fsq), jnp.float32).at[ba_oob, cell].set(1.0, mode="drop")

        return (obj.reshape(B * A, 1, fsq),
                tm.reshape(B * A, 1, fsq),
                ba.reshape(B * L),
                cell,
                sel.reshape(B * L),
                tvec,
                sscale)

    def _forward(self, xin, labels):
        n_ch = 5 + self.n_classes
        A = self.n_anchors
        loss_xy = loss_wh = loss_obj = loss_cls = loss_l2 = jnp.float32(0.0)

        for oid, output in enumerate(xin):
            B = output.shape[0]
            fs = output.shape[2]
            fsq = fs * fs

            # NCHW [B, A*n_ch, fs, fs] -> channel-major slabs [B*A, n_ch, fs*fs]
            # (pure reshape; no host-side transpose / relayout)
            raw3 = output.reshape(B * A, n_ch, fsq)
            awh3 = jnp.tile(self.masked_anchors[oid], (B, 1)).reshape(B * A, 2, 1)

            pred4 = _decode_call(raw3, self.grid_xy[oid], awh3)

            om3, tm3, ba, cell, sel, tvec, sscale = self._build_target(
                pred4, labels, oid, fs, n_ch, B)

            # dense pass: objectness channel only (3 rows / slab)
            raw_obj3 = jax.lax.slice_in_dim(raw3, 4, 5, axis=1)        # (BA, 1, fsq)
            l_obj, l2_obj = _obj_loss_call(raw_obj3, om3, tm3)

            # sparse pass: xy / wh / cls / non-obj l2 at matched cells only
            l_xy, l_wh, l_cl, l2_sp = _sparse_matched_loss(
                raw3, ba, cell, sel, tvec, sscale)

            loss_xy = loss_xy + l_xy
            loss_wh = loss_wh + l_wh
            loss_obj = loss_obj + l_obj
            loss_cls = loss_cls + l_cl
            loss_l2 = loss_l2 + l2_obj + l2_sp

        loss = loss_xy + loss_wh + loss_obj + loss_cls
        return loss, loss_xy, loss_wh, loss_obj, loss_cls, loss_l2

    def __call__(self, xin, labels):
        return self._jit_forward(tuple(xin), labels)


# ----------------------------------------------------------------------------
if __name__ == "__main__":
    key = jax.random.PRNGKey(0)
    batch = 2
    n_classes = 11          # n_ch = 16 (small-shape test)
    image_size = 128        # fsizes 16 / 8 / 4 for strides 8 / 16 / 32

    yolo_loss = YoloLossPallas(n_classes=n_classes, n_anchors=3,
                               batch=batch, image_size=image_size)

    keys = jax.random.split(key, 3)
    xin = []
    for oid, stride in enumerate([8, 16, 32]):
        fs = image_size // stride
        x = 0.5 * jax.random.normal(keys[oid], (batch, 3 * (5 + n_classes), fs, fs),
                                    dtype=jnp.float32)
        xin.append(x)

    # labels: [B, L, 5] = (x1, y1, x2, y2, class); zero rows = padding
    labels = jnp.array(
        [[[10.0, 12.0, 60.0, 70.0, 3.0],
          [40.0, 30.0, 120.0, 90.0, 7.0],
          [0.0, 0.0, 0.0, 0.0, 0.0],
          [0.0, 0.0, 0.0, 0.0, 0.0]],
         [[5.0, 8.0, 30.0, 28.0, 1.0],
          [64.0, 64.0, 120.0, 120.0, 5.0],
          [20.0, 90.0, 50.0, 126.0, 9.0],
          [0.0, 0.0, 0.0, 0.0, 0.0]]], dtype=jnp.float32)

    loss, loss_xy, loss_wh, loss_obj, loss_cls, loss_l2 = yolo_loss(xin, labels)
    jax.block_until_ready(loss)
    print("KERNEL_OK")
</pallas_src>

<mosaic_0001>
module attributes {stable_mosaic.version = 11 : i64} {
  func.func @_obj_loss_kernel(%arg0: i32, %arg1: memref<3x1x16xf32, #tpu.memory_space<vmem>>, %arg2: memref<3x1x16xf32, #tpu.memory_space<vmem>>, %arg3: memref<3x1x16xf32, #tpu.memory_space<vmem>>, %arg4: memref<1x1x128xf32, #tpu.memory_space<vmem>>) attributes {dimension_semantics = [#tpu.dimension_semantics<parallel>], iteration_bounds = array<i64: 2>, scalar_prefetch = 0 : i64, scratch_operands = 0 : i64, tpu.core_type = #tpu.core_type<tc>, window_params = [{transform_indices = @transform_0, window_bounds = array<i64: 3, 1, 16>}, {transform_indices = @transform_1, window_bounds = array<i64: 3, 1, 16>}, {transform_indices = @transform_2, window_bounds = array<i64: 3, 1, 16>}, {transform_indices = @transform_3, window_bounds = array<i64: 1, 1, 128>}]} {
    %c0 = arith.constant 0 : index
    %c0_0 = arith.constant 0 : index
    %c0_1 = arith.constant 0 : index
    %0 = vector.load %arg1[%c0, %c0_0, %c0_1] : memref<3x1x16xf32, #tpu.memory_space<vmem>>, vector<3x1x16xf32>
    %c0_2 = arith.constant 0 : index
    %c0_3 = arith.constant 0 : index
    %c0_4 = arith.constant 0 : index
    %1 = vector.load %arg2[%c0_2, %c0_3, %c0_4] : memref<3x1x16xf32, #tpu.memory_space<vmem>>, vector<3x1x16xf32>
    %c0_5 = arith.constant 0 : index
    %c0_6 = arith.constant 0 : index
    %c0_7 = arith.constant 0 : index
    %2 = vector.load %arg3[%c0_5, %c0_6, %c0_7] : memref<3x1x16xf32, #tpu.memory_space<vmem>>, vector<3x1x16xf32>
    %3 = arith.negf %0 : vector<3x1x16xf32>
    %4 = math.exp %3 : vector<3x1x16xf32>
    %cst = arith.constant 1.000000e+00 : f32
    %5 = vector.broadcast %cst : f32 to vector<3x1x16xf32>
    %6 = arith.addf %5, %4 : vector<3x1x16xf32>
    %7 = arith.divf %5, %6 : vector<3x1x16xf32>
    %8 = arith.mulf %7, %1 : vector<3x1x16xf32>
    %9 = arith.mulf %2, %1 : vector<3x1x16xf32>
    %10 = math.log %8 : vector<3x1x16xf32>
    %cst_8 = arith.constant -1.000000e+02 : f32
    %11 = vector.broadcast %cst_8 : f32 to vector<3x1x16xf32>
    %12 = arith.maximumf %10, %11 : vector<3x1x16xf32>
    %cst_9 = arith.constant 1.000000e+00 : f32
    %13 = vector.broadcast %cst_9 : f32 to vector<3x1x16xf32>
    %14 = arith.subf %13, %8 : vector<3x1x16xf32>
    %15 = math.log %14 : vector<3x1x16xf32>
    %cst_10 = arith.constant -1.000000e+02 : f32
    %16 = vector.broadcast %cst_10 : f32 to vector<3x1x16xf32>
    %17 = arith.maximumf %15, %16 : vector<3x1x16xf32>
    %18 = arith.mulf %9, %12 : vector<3x1x16xf32>
    %cst_11 = arith.constant 1.000000e+00 : f32
    %19 = vector.broadcast %cst_11 : f32 to vector<3x1x16xf32>
    %20 = arith.subf %19, %9 : vector<3x1x16xf32>
    %21 = arith.mulf %20, %17 : vector<3x1x16xf32>
    %22 = arith.addf %18, %21 : vector<3x1x16xf32>
    %cst_12 = arith.constant 0.000000e+00 : f32
    %23 = vector.broadcast %cst_12 : f32 to vector<3x1x16xf32>
    %24 = arith.subf %23, %22 : vector<3x1x16xf32>
    %25 = vector.shape_cast %24 : vector<3x1x16xf32> to vector<1x3x1x16xf32>
    %cst_13 = arith.constant dense<0.000000e+00> : vector<1xf32>
    %26 = vector.multi_reduction <add>, %25, %cst_13 [1, 2, 3] : vector<1x3x1x16xf32> to vector<1xf32>
    %27 = vector.shape_cast %26 : vector<1xf32> to vector<1x1x1x1xf32>
    %28 = vector.extract %27[0, 0, 0, 0] : f32 from vector<1x1x1x1xf32>
    %29 = arith.subf %8, %9 : vector<3x1x16xf32>
    %30 = arith.mulf %29, %29 : vector<3x1x16xf32>
    %31 = vector.shape_cast %30 : vector<3x1x16xf32> to vector<1x3x1x16xf32>
    %cst_14 = arith.constant dense<0.000000e+00> : vector<1xf32>
    %32 = vector.multi_reduction <add>, %31, %cst_14 [1, 2, 3] : vector<1x3x1x16xf32> to vector<1xf32>
    %33 = vector.shape_cast %32 : vector<1xf32> to vector<1x1x1x1xf32>
    %34 = vector.extract %33[0, 0, 0, 0] : f32 from vector<1x1x1x1xf32>
    %35 = tpu.iota {dimensions = array<i32: 1>} : vector<1x128xi32>
    %c0_i32 = arith.constant 0 : i32
    %36 = vector.broadcast %c0_i32 : i32 to vector<1x128xi32>
    %37 = arith.cmpi eq, %35, %36 : vector<1x128xi32>
    %c1_i32 = arith.constant 1 : i32
    %38 = vector.broadcast %c1_i32 : i32 to vector<1x128xi32>
    %39 = arith.cmpi eq, %35, %38 : vector<1x128xi32>
    %cst_15 = arith.constant 0.000000e+00 : f32
    %40 = vector.broadcast %34 : f32 to vector<1x128xf32>
    %41 = vector.broadcast %cst_15 : f32 to vector<1x128xf32>
    %42 = arith.select %39, %40, %41 : vector<1x128xi1>, vector<1x128xf32>
    %43 = vector.broadcast %28 : f32 to vector<1x128xf32>
    %44 = arith.select %37, %43, %42 : vector<1x128xi1>, vector<1x128xf32>
    %c0_16 = arith.constant 0 : index
    %c0_17 = arith.constant 0 : index
    %c0_18 = arith.constant 0 : index
    %45 = vector.load %arg4[%c0_16, %c0_17, %c0_18] : memref<1x1x128xf32, #tpu.memory_space<vmem>>, vector<1x1x128xf32>
    %46 = vector.shape_cast %45 : vector<1x1x128xf32> to vector<1x128xf32>
    %47 = vector.shape_cast %44 : vector<1x128xf32> to vector<1x1x128xf32>
    tpu.vector_store %arg4[%c0_16, %c0_17, %c0_18], %47 {strides = array<i32>} : memref<1x1x128xf32, #tpu.memory_space<vmem>>, vector<1x1x128xf32>,
    return
  }
  func.func @transform_0(%arg0: i32) -> (i32, i32, i32) {
    %c0_i32 = arith.constant 0 : i32
    %c0_i32_0 = arith.constant 0 : i32
    %c0_i32_1 = arith.constant 0 : i32
    return %arg0, %c0_i32, %c0_i32_0 : i32, i32, i32
  }
  func.func @transform_1(%arg0: i32) -> (i32, i32, i32) {
    %c0_i32 = arith.constant 0 : i32
    %c0_i32_0 = arith.constant 0 : i32
    %c0_i32_1 = arith.constant 0 : i32
    return %arg0, %c0_i32, %c0_i32_0 : i32, i32, i32
  }
  func.func @transform_2(%arg0: i32) -> (i32, i32, i32) {
    %c0_i32 = arith.constant 0 : i32
    %c0_i32_0 = arith.constant 0 : i32
    %c0_i32_1 = arith.constant 0 : i32
    return %arg0, %c0_i32, %c0_i32_0 : i32, i32, i32
  }
  func.func @transform_3(%arg0: i32) -> (i32, i32, i32) {
    %c0_i32 = arith.constant 0 : i32
    %c0_i32_0 = arith.constant 0 : i32
    %c0_i32_1 = arith.constant 0 : i32
    return %arg0, %c0_i32, %c0_i32_0 : i32, i32, i32
  }
}

module attributes {stable_mosaic.version = 11 : i64} {
  func.func @_decode_kernel(%arg0: i32, %arg1: memref<3x8x16xf32, #tpu.memory_space<vmem>>, %arg2: memref<2x16xf32, #tpu.memory_space<vmem>>, %arg3: memref<3x2x1xf32, #tpu.memory_space<vmem>>, %arg4: memref<3x4x16xf32, #tpu.memory_space<vmem>>) attributes {dimension_semantics = [#tpu.dimension_semantics<parallel>], iteration_bounds = array<i64: 2>, scalar_prefetch = 0 : i64, scratch_operands = 0 : i64, tpu.core_type = #tpu.core_type<tc>, window_params = [{transform_indices = @transform_0, window_bounds = array<i64: 3, 8, 16>}, {pipeline_mode = #tpu.pipeline_mode<synchronous>, transform_indices = @transform_1, window_bounds = array<i64: 2, 16>}, {transform_indices = @transform_2, window_bounds = array<i64: 3, 2, 1>}, {transform_indices = @transform_3, window_bounds = array<i64: 3, 4, 16>}]} {
    %c0 = arith.constant 0 : index
    %c0_0 = arith.constant 0 : index
    %c0_1 = arith.constant 0 : index
    %0 = vector.load %arg1[%c0, %c0_0, %c0_1] : memref<3x8x16xf32, #tpu.memory_space<vmem>>, vector<3x8x16xf32>
    %c0_2 = arith.constant 0 : index
    %c0_3 = arith.constant 0 : index
    %1 = vector.load %arg2[%c0_2, %c0_3] : memref<2x16xf32, #tpu.memory_space<vmem>>, vector<2x16xf32>
    %c0_4 = arith.constant 0 : index
    %c0_5 = arith.constant 0 : index
    %c0_6 = arith.constant 0 : index
    %2 = vector.load %arg3[%c0_4, %c0_5, %c0_6] : memref<3x2x1xf32, #tpu.memory_space<vmem>>, vector<3x2x1xf32>
    %3 = vector.extract_strided_slice %0 {offsets = [0, 0, 0], sizes = [3, 2, 16], strides = [1, 1, 1]} : vector<3x8x16xf32> to vector<3x2x16xf32>
    %4 = arith.negf %3 : vector<3x2x16xf32>
    %5 = math.exp %4 : vector<3x2x16xf32>
    %cst = arith.constant 1.000000e+00 : f32
    %6 = vector.broadcast %cst : f32 to vector<3x2x16xf32>
    %7 = arith.addf %6, %5 : vector<3x2x16xf32>
    %8 = arith.divf %6, %7 : vector<3x2x16xf32>
    %9 = vector.shape_cast %1 : vector<2x16xf32> to vector<1x2x16xf32>
    %10 = vector.broadcast %9 : vector<1x2x16xf32> to vector<3x2x16xf32>
    %11 = arith.addf %8, %10 : vector<3x2x16xf32>
    %c0_7 = arith.constant 0 : index
    %c0_8 = arith.constant 0 : index
    %c0_9 = arith.constant 0 : index
    %12 = vector.load %arg4[%c0_7, %c0_8, %c0_9] : memref<3x4x16xf32, #tpu.memory_space<vmem>>, vector<3x2x16xf32>
    tpu.vector_store %arg4[%c0_7, %c0_8, %c0_9], %11 {strides = array<i32>} : memref<3x4x16xf32, #tpu.memory_space<vmem>>, vector<3x2x16xf32>,
    %13 = vector.extract_strided_slice %0 {offsets = [0, 2, 0], sizes = [3, 2, 16], strides = [1, 1, 1]} : vector<3x8x16xf32> to vector<3x2x16xf32>
    %14 = math.exp %13 : vector<3x2x16xf32>
    %15 = vector.broadcast %2 : vector<3x2x1xf32> to vector<3x2x16xf32>
    %16 = arith.mulf %14, %15 : vector<3x2x16xf32>
    %c0_10 = arith.constant 0 : index
    %c2 = arith.constant 2 : index
    %c0_11 = arith.constant 0 : index
    %17 = vector.load %arg4[%c0_10, %c2, %c0_11] : memref<3x4x16xf32, #tpu.memory_space<vmem>>, vector<3x2x16xf32>
    tpu.vector_store %arg4[%c0_10, %c2, %c0_11], %16 {strides = array<i32>} : memref<3x4x16xf32, #tpu.memory_space<vmem>>, vector<3x2x16xf32>,
    return
  }
  func.func @transform_0(%arg0: i32) -> (i32, i32, i32) {
    %c0_i32 = arith.constant 0 : i32
    %c0_i32_0 = arith.constant 0 : i32
    %c0_i32_1 = arith.constant 0 : i32
    return %arg0, %c0_i32, %c0_i32_0 : i32, i32, i32
  }
  func.func @transform_1(%arg0: i32) -> (i32, i32) {
    %c0_i32 = arith.constant 0 : i32
    %c0_i32_0 = arith.constant 0 : i32
    %c0_i32_1 = arith.constant 0 : i32
    return %c0_i32, %c0_i32_0 : i32, i32
  }
  func.func @transform_2(%arg0: i32) -> (i32, i32, i32) {
    %c0_i32 = arith.constant 0 : i32
    %c0_i32_0 = arith.constant 0 : i32
    %c0_i32_1 = arith.constant 0 : i32
    return %arg0, %c0_i32, %c0_i32_0 : i32, i32, i32
  }
  func.func @transform_3(%arg0: i32) -> (i32, i32, i32) {
    %c0_i32 = arith.constant 0 : i32
    %c0_i32_0 = arith.constant 0 : i32
    %c0_i32_1 = arith.constant 0 : i32
    return %arg0, %c0_i32, %c0_i32_0 : i32, i32, i32
  }
}

module attributes {stable_mosaic.version = 11 : i64} {
  func.func @_decode_kernel(%arg0: i32, %arg1: memref<3x8x64xf32, #tpu.memory_space<vmem>>, %arg2: memref<2x64xf32, #tpu.memory_space<vmem>>, %arg3: memref<3x2x1xf32, #tpu.memory_space<vmem>>, %arg4: memref<3x4x64xf32, #tpu.memory_space<vmem>>) attributes {dimension_semantics = [#tpu.dimension_semantics<parallel>], iteration_bounds = array<i64: 2>, scalar_prefetch = 0 : i64, scratch_operands = 0 : i64, tpu.core_type = #tpu.core_type<tc>, window_params = [{transform_indices = @transform_0, window_bounds = array<i64: 3, 8, 64>}, {pipeline_mode = #tpu.pipeline_mode<synchronous>, transform_indices = @transform_1, window_bounds = array<i64: 2, 64>}, {transform_indices = @transform_2, window_bounds = array<i64: 3, 2, 1>}, {transform_indices = @transform_3, window_bounds = array<i64: 3, 4, 64>}]} {
    %c0 = arith.constant 0 : index
    %c0_0 = arith.constant 0 : index
    %c0_1 = arith.constant 0 : index
    %0 = vector.load %arg1[%c0, %c0_0, %c0_1] : memref<3x8x64xf32, #tpu.memory_space<vmem>>, vector<3x8x64xf32>
    %c0_2 = arith.constant 0 : index
    %c0_3 = arith.constant 0 : index
    %1 = vector.load %arg2[%c0_2, %c0_3] : memref<2x64xf32, #tpu.memory_space<vmem>>, vector<2x64xf32>
    %c0_4 = arith.constant 0 : index
    %c0_5 = arith.constant 0 : index
    %c0_6 = arith.constant 0 : index
    %2 = vector.load %arg3[%c0_4, %c0_5, %c0_6] : memref<3x2x1xf32, #tpu.memory_space<vmem>>, vector<3x2x1xf32>
    %3 = vector.extract_strided_slice %0 {offsets = [0, 0, 0], sizes = [3, 2, 64], strides = [1, 1, 1]} : vector<3x8x64xf32> to vector<3x2x64xf32>
    %4 = arith.negf %3 : vector<3x2x64xf32>
    %5 = math.exp %4 : vector<3x2x64xf32>
    %cst = arith.constant 1.000000e+00 : f32
    %6 = vector.broadcast %cst : f32 to vector<3x2x64xf32>
    %7 = arith.addf %6, %5 : vector<3x2x64xf32>
    %8 = arith.divf %6, %7 : vector<3x2x64xf32>
    %9 = vector.shape_cast %1 : vector<2x64xf32> to vector<1x2x64xf32>
    %10 = vector.broadcast %9 : vector<1x2x64xf32> to vector<3x2x64xf32>
    %11 = arith.addf %8, %10 : vector<3x2x64xf32>
    %c0_7 = arith.constant 0 : index
    %c0_8 = arith.constant 0 : index
    %c0_9 = arith.constant 0 : index
    %12 = vector.load %arg4[%c0_7, %c0_8, %c0_9] : memref<3x4x64xf32, #tpu.memory_space<vmem>>, vector<3x2x64xf32>
    tpu.vector_store %arg4[%c0_7, %c0_8, %c0_9], %11 {strides = array<i32>} : memref<3x4x64xf32, #tpu.memory_space<vmem>>, vector<3x2x64xf32>,
    %13 = vector.extract_strided_slice %0 {offsets = [0, 2, 0], sizes = [3, 2, 64], strides = [1, 1, 1]} : vector<3x8x64xf32> to vector<3x2x64xf32>
    %14 = math.exp %13 : vector<3x2x64xf32>
    %15 = vector.broadcast %2 : vector<3x2x1xf32> to vector<3x2x64xf32>
    %16 = arith.mulf %14, %15 : vector<3x2x64xf32>
    %c0_10 = arith.constant 0 : index
    %c2 = arith.constant 2 : index
    %c0_11 = arith.constant 0 : index
    %17 = vector.load %arg4[%c0_10, %c2, %c0_11] : memref<3x4x64xf32, #tpu.memory_space<vmem>>, vector<3x2x64xf32>
    tpu.vector_store %arg4[%c0_10, %c2, %c0_11], %16 {strides = array<i32>} : memref<3x4x64xf32, #tpu.memory_space<vmem>>, vector<3x2x64xf32>,
    return
  }
  func.func @transform_0(%arg0: i32) -> (i32, i32, i32) {
    %c0_i32 = arith.constant 0 : i32
    %c0_i32_0 = arith.constant 0 : i32
    %c0_i32_1 = arith.constant 0 : i32
    return %arg0, %c0_i32, %c0_i32_0 : i32, i32, i32
  }
  func.func @transform_1(%arg0: i32) -> (i32, i32) {
    %c0_i32 = arith.constant 0 : i32
    %c0_i32_0 = arith.constant 0 : i32
    %c0_i32_1 = arith.constant 0 : i32
    return %c0_i32, %c0_i32_0 : i32, i32
  }
  func.func @transform_2(%arg0: i32) -> (i32, i32, i32) {
    %c0_i32 = arith.constant 0 : i32
    %c0_i32_0 = arith.constant 0 : i32
    %c0_i32_1 = arith.constant 0 : i32
    return %arg0, %c0_i32, %c0_i32_0 : i32, i32, i32
  }
  func.func @transform_3(%arg0: i32) -> (i32, i32, i32) {
    %c0_i32 = arith.constant 0 : i32
    %c0_i32_0 = arith.constant 0 : i32
    %c0_i32_1 = arith.constant 0 : i32
    return %arg0, %c0_i32, %c0_i32_0 : i32, i32, i32
  }
}

module attributes {stable_mosaic.version = 11 : i64} {
  func.func @_obj_loss_kernel(%arg0: i32, %arg1: memref<3x1x64xf32, #tpu.memory_space<vmem>>, %arg2: memref<3x1x64xf32, #tpu.memory_space<vmem>>, %arg3: memref<3x1x64xf32, #tpu.memory_space<vmem>>, %arg4: memref<1x1x128xf32, #tpu.memory_space<vmem>>) attributes {dimension_semantics = [#tpu.dimension_semantics<parallel>], iteration_bounds = array<i64: 2>, scalar_prefetch = 0 : i64, scratch_operands = 0 : i64, tpu.core_type = #tpu.core_type<tc>, window_params = [{transform_indices = @transform_0, window_bounds = array<i64: 3, 1, 64>}, {transform_indices = @transform_1, window_bounds = array<i64: 3, 1, 64>}, {transform_indices = @transform_2, window_bounds = array<i64: 3, 1, 64>}, {transform_indices = @transform_3, window_bounds = array<i64: 1, 1, 128>}]} {
    %c0 = arith.constant 0 : index
    %c0_0 = arith.constant 0 : index
    %c0_1 = arith.constant 0 : index
    %0 = vector.load %arg1[%c0, %c0_0, %c0_1] : memref<3x1x64xf32, #tpu.memory_space<vmem>>, vector<3x1x64xf32>
    %c0_2 = arith.constant 0 : index
    %c0_3 = arith.constant 0 : index
    %c0_4 = arith.constant 0 : index
    %1 = vector.load %arg2[%c0_2, %c0_3, %c0_4] : memref<3x1x64xf32, #tpu.memory_space<vmem>>, vector<3x1x64xf32>
    %c0_5 = arith.constant 0 : index
    %c0_6 = arith.constant 0 : index
    %c0_7 = arith.constant 0 : index
    %2 = vector.load %arg3[%c0_5, %c0_6, %c0_7] : memref<3x1x64xf32, #tpu.memory_space<vmem>>, vector<3x1x64xf32>
    %3 = arith.negf %0 : vector<3x1x64xf32>
    %4 = math.exp %3 : vector<3x1x64xf32>
    %cst = arith.constant 1.000000e+00 : f32
    %5 = vector.broadcast %cst : f32 to vector<3x1x64xf32>
    %6 = arith.addf %5, %4 : vector<3x1x64xf32>
    %7 = arith.divf %5, %6 : vector<3x1x64xf32>
    %8 = arith.mulf %7, %1 : vector<3x1x64xf32>
    %9 = arith.mulf %2, %1 : vector<3x1x64xf32>
    %10 = math.log %8 : vector<3x1x64xf32>
    %cst_8 = arith.constant -1.000000e+02 : f32
    %11 = vector.broadcast %cst_8 : f32 to vector<3x1x64xf32>
    %12 = arith.maximumf %10, %11 : vector<3x1x64xf32>
    %cst_9 = arith.constant 1.000000e+00 : f32
    %13 = vector.broadcast %cst_9 : f32 to vector<3x1x64xf32>
    %14 = arith.subf %13, %8 : vector<3x1x64xf32>
    %15 = math.log %14 : vector<3x1x64xf32>
    %cst_10 = arith.constant -1.000000e+02 : f32
    %16 = vector.broadcast %cst_10 : f32 to vector<3x1x64xf32>
    %17 = arith.maximumf %15, %16 : vector<3x1x64xf32>
    %18 = arith.mulf %9, %12 : vector<3x1x64xf32>
    %cst_11 = arith.constant 1.000000e+00 : f32
    %19 = vector.broadcast %cst_11 : f32 to vector<3x1x64xf32>
    %20 = arith.subf %19, %9 : vector<3x1x64xf32>
    %21 = arith.mulf %20, %17 : vector<3x1x64xf32>
    %22 = arith.addf %18, %21 : vector<3x1x64xf32>
    %cst_12 = arith.constant 0.000000e+00 : f32
    %23 = vector.broadcast %cst_12 : f32 to vector<3x1x64xf32>
    %24 = arith.subf %23, %22 : vector<3x1x64xf32>
    %25 = vector.shape_cast %24 : vector<3x1x64xf32> to vector<1x3x1x64xf32>
    %cst_13 = arith.constant dense<0.000000e+00> : vector<1xf32>
    %26 = vector.multi_reduction <add>, %25, %cst_13 [1, 2, 3] : vector<1x3x1x64xf32> to vector<1xf32>
    %27 = vector.shape_cast %26 : vector<1xf32> to vector<1x1x1x1xf32>
    %28 = vector.extract %27[0, 0, 0, 0] : f32 from vector<1x1x1x1xf32>
    %29 = arith.subf %8, %9 : vector<3x1x64xf32>
    %30 = arith.mulf %29, %29 : vector<3x1x64xf32>
    %31 = vector.shape_cast %30 : vector<3x1x64xf32> to vector<1x3x1x64xf32>
    %cst_14 = arith.constant dense<0.000000e+00> : vector<1xf32>
    %32 = vector.multi_reduction <add>, %31, %cst_14 [1, 2, 3] : vector<1x3x1x64xf32> to vector<1xf32>
    %33 = vector.shape_cast %32 : vector<1xf32> to vector<1x1x1x1xf32>
    %34 = vector.extract %33[0, 0, 0, 0] : f32 from vector<1x1x1x1xf32>
    %35 = tpu.iota {dimensions = array<i32: 1>} : vector<1x128xi32>
    %c0_i32 = arith.constant 0 : i32
    %36 = vector.broadcast %c0_i32 : i32 to vector<1x128xi32>
    %37 = arith.cmpi eq, %35, %36 : vector<1x128xi32>
    %c1_i32 = arith.constant 1 : i32
    %38 = vector.broadcast %c1_i32 : i32 to vector<1x128xi32>
    %39 = arith.cmpi eq, %35, %38 : vector<1x128xi32>
    %cst_15 = arith.constant 0.000000e+00 : f32
    %40 = vector.broadcast %34 : f32 to vector<1x128xf32>
    %41 = vector.broadcast %cst_15 : f32 to vector<1x128xf32>
    %42 = arith.select %39, %40, %41 : vector<1x128xi1>, vector<1x128xf32>
    %43 = vector.broadcast %28 : f32 to vector<1x128xf32>
    %44 = arith.select %37, %43, %42 : vector<1x128xi1>, vector<1x128xf32>
    %c0_16 = arith.constant 0 : index
    %c0_17 = arith.constant 0 : index
    %c0_18 = arith.constant 0 : index
    %45 = vector.load %arg4[%c0_16, %c0_17, %c0_18] : memref<1x1x128xf32, #tpu.memory_space<vmem>>, vector<1x1x128xf32>
    %46 = vector.shape_cast %45 : vector<1x1x128xf32> to vector<1x128xf32>
    %47 = vector.shape_cast %44 : vector<1x128xf32> to vector<1x1x128xf32>
    tpu.vector_store %arg4[%c0_16, %c0_17, %c0_18], %47 {strides = array<i32>} : memref<1x1x128xf32, #tpu.memory_space<vmem>>, vector<1x1x128xf32>,
    return
  }
  func.func @transform_0(%arg0: i32) -> (i32, i32, i32) {
    %c0_i32 = arith.constant 0 : i32
    %c0_i32_0 = arith.constant 0 : i32
    %c0_i32_1 = arith.constant 0 : i32
    return %arg0, %c0_i32, %c0_i32_0 : i32, i32, i32
  }
  func.func @transform_1(%arg0: i32) -> (i32, i32, i32) {
    %c0_i32 = arith.constant 0 : i32
    %c0_i32_0 = arith.constant 0 : i32
    %c0_i32_1 = arith.constant 0 : i32
    return %arg0, %c0_i32, %c0_i32_0 : i32, i32, i32
  }
  func.func @transform_2(%arg0: i32) -> (i32, i32, i32) {
    %c0_i32 = arith.constant 0 : i32
    %c0_i32_0 = arith.constant 0 : i32
    %c0_i32_1 = arith.constant 0 : i32
    return %arg0, %c0_i32, %c0_i32_0 : i32, i32, i32
  }
  func.func @transform_3(%arg0: i32) -> (i32, i32, i32) {
    %c0_i32 = arith.constant 0 : i32
    %c0_i32_0 = arith.constant 0 : i32
    %c0_i32_1 = arith.constant 0 : i32
    return %arg0, %c0_i32, %c0_i32_0 : i32, i32, i32
  }
}

module attributes {stable_mosaic.version = 11 : i64} {
  func.func @_decode_kernel(%arg0: i32, %arg1: memref<3x8x256xf32, #tpu.memory_space<vmem>>, %arg2: memref<2x256xf32, #tpu.memory_space<vmem>>, %arg3: memref<3x2x1xf32, #tpu.memory_space<vmem>>, %arg4: memref<3x4x256xf32, #tpu.memory_space<vmem>>) attributes {dimension_semantics = [#tpu.dimension_semantics<parallel>], iteration_bounds = array<i64: 2>, scalar_prefetch = 0 : i64, scratch_operands = 0 : i64, tpu.core_type = #tpu.core_type<tc>, window_params = [{transform_indices = @transform_0, window_bounds = array<i64: 3, 8, 256>}, {pipeline_mode = #tpu.pipeline_mode<synchronous>, transform_indices = @transform_1, window_bounds = array<i64: 2, 256>}, {transform_indices = @transform_2, window_bounds = array<i64: 3, 2, 1>}, {transform_indices = @transform_3, window_bounds = array<i64: 3, 4, 256>}]} {
    %c0 = arith.constant 0 : index
    %c0_0 = arith.constant 0 : index
    %c0_1 = arith.constant 0 : index
    %0 = vector.load %arg1[%c0, %c0_0, %c0_1] : memref<3x8x256xf32, #tpu.memory_space<vmem>>, vector<3x8x256xf32>
    %c0_2 = arith.constant 0 : index
    %c0_3 = arith.constant 0 : index
    %1 = vector.load %arg2[%c0_2, %c0_3] : memref<2x256xf32, #tpu.memory_space<vmem>>, vector<2x256xf32>
    %c0_4 = arith.constant 0 : index
    %c0_5 = arith.constant 0 : index
    %c0_6 = arith.constant 0 : index
    %2 = vector.load %arg3[%c0_4, %c0_5, %c0_6] : memref<3x2x1xf32, #tpu.memory_space<vmem>>, vector<3x2x1xf32>
    %3 = vector.extract_strided_slice %0 {offsets = [0, 0, 0], sizes = [3, 2, 256], strides = [1, 1, 1]} : vector<3x8x256xf32> to vector<3x2x256xf32>
    %4 = arith.negf %3 : vector<3x2x256xf32>
    %5 = math.exp %4 : vector<3x2x256xf32>
    %cst = arith.constant 1.000000e+00 : f32
    %6 = vector.broadcast %cst : f32 to vector<3x2x256xf32>
    %7 = arith.addf %6, %5 : vector<3x2x256xf32>
    %8 = arith.divf %6, %7 : vector<3x2x256xf32>
    %9 = vector.shape_cast %1 : vector<2x256xf32> to vector<1x2x256xf32>
    %10 = vector.broadcast %9 : vector<1x2x256xf32> to vector<3x2x256xf32>
    %11 = arith.addf %8, %10 : vector<3x2x256xf32>
    %c0_7 = arith.constant 0 : index
    %c0_8 = arith.constant 0 : index
    %c0_9 = arith.constant 0 : index
    %12 = vector.load %arg4[%c0_7, %c0_8, %c0_9] : memref<3x4x256xf32, #tpu.memory_space<vmem>>, vector<3x2x256xf32>
    tpu.vector_store %arg4[%c0_7, %c0_8, %c0_9], %11 {strides = array<i32>} : memref<3x4x256xf32, #tpu.memory_space<vmem>>, vector<3x2x256xf32>,
    %13 = vector.extract_strided_slice %0 {offsets = [0, 2, 0], sizes = [3, 2, 256], strides = [1, 1, 1]} : vector<3x8x256xf32> to vector<3x2x256xf32>
    %14 = math.exp %13 : vector<3x2x256xf32>
    %15 = vector.broadcast %2 : vector<3x2x1xf32> to vector<3x2x256xf32>
    %16 = arith.mulf %14, %15 : vector<3x2x256xf32>
    %c0_10 = arith.constant 0 : index
    %c2 = arith.constant 2 : index
    %c0_11 = arith.constant 0 : index
    %17 = vector.load %arg4[%c0_10, %c2, %c0_11] : memref<3x4x256xf32, #tpu.memory_space<vmem>>, vector<3x2x256xf32>
    tpu.vector_store %arg4[%c0_10, %c2, %c0_11], %16 {strides = array<i32>} : memref<3x4x256xf32, #tpu.memory_space<vmem>>, vector<3x2x256xf32>,
    return
  }
  func.func @transform_0(%arg0: i32) -> (i32, i32, i32) {
    %c0_i32 = arith.constant 0 : i32
    %c0_i32_0 = arith.constant 0 : i32
    %c0_i32_1 = arith.constant 0 : i32
    return %arg0, %c0_i32, %c0_i32_0 : i32, i32, i32
  }
  func.func @transform_1(%arg0: i32) -> (i32, i32) {
    %c0_i32 = arith.constant 0 : i32
    %c0_i32_0 = arith.constant 0 : i32
    %c0_i32_1 = arith.constant 0 : i32
    return %c0_i32, %c0_i32_0 : i32, i32
  }
  func.func @transform_2(%arg0: i32) -> (i32, i32, i32) {
    %c0_i32 = arith.constant 0 : i32
    %c0_i32_0 = arith.constant 0 : i32
    %c0_i32_1 = arith.constant 0 : i32
    return %arg0, %c0_i32, %c0_i32_0 : i32, i32, i32
  }
  func.func @transform_3(%arg0: i32) -> (i32, i32, i32) {
    %c0_i32 = arith.constant 0 : i32
    %c0_i32_0 = arith.constant 0 : i32
    %c0_i32_1 = arith.constant 0 : i32
    return %arg0, %c0_i32, %c0_i32_0 : i32, i32, i32
  }
}

module attributes {stable_mosaic.version = 11 : i64} {
  func.func @_obj_loss_kernel(%arg0: i32, %arg1: memref<3x1x256xf32, #tpu.memory_space<vmem>>, %arg2: memref<3x1x256xf32, #tpu.memory_space<vmem>>, %arg3: memref<3x1x256xf32, #tpu.memory_space<vmem>>, %arg4: memref<1x1x128xf32, #tpu.memory_space<vmem>>) attributes {dimension_semantics = [#tpu.dimension_semantics<parallel>], iteration_bounds = array<i64: 2>, scalar_prefetch = 0 : i64, scratch_operands = 0 : i64, tpu.core_type = #tpu.core_type<tc>, window_params = [{transform_indices = @transform_0, window_bounds = array<i64: 3, 1, 256>}, {transform_indices = @transform_1, window_bounds = array<i64: 3, 1, 256>}, {transform_indices = @transform_2, window_bounds = array<i64: 3, 1, 256>}, {transform_indices = @transform_3, window_bounds = array<i64: 1, 1, 128>}]} {
    %c0 = arith.constant 0 : index
    %c0_0 = arith.constant 0 : index
    %c0_1 = arith.constant 0 : index
    %0 = vector.load %arg1[%c0, %c0_0, %c0_1] : memref<3x1x256xf32, #tpu.memory_space<vmem>>, vector<3x1x256xf32>
    %c0_2 = arith.constant 0 : index
    %c0_3 = arith.constant 0 : index
    %c0_4 = arith.constant 0 : index
    %1 = vector.load %arg2[%c0_2, %c0_3, %c0_4] : memref<3x1x256xf32, #tpu.memory_space<vmem>>, vector<3x1x256xf32>
    %c0_5 = arith.constant 0 : index
    %c0_6 = arith.constant 0 : index
    %c0_7 = arith.constant 0 : index
    %2 = vector.load %arg3[%c0_5, %c0_6, %c0_7] : memref<3x1x256xf32, #tpu.memory_space<vmem>>, vector<3x1x256xf32>
    %3 = arith.negf %0 : vector<3x1x256xf32>
    %4 = math.exp %3 : vector<3x1x256xf32>
    %cst = arith.constant 1.000000e+00 : f32
    %5 = vector.broadcast %cst : f32 to vector<3x1x256xf32>
    %6 = arith.addf %5, %4 : vector<3x1x256xf32>
    %7 = arith.divf %5, %6 : vector<3x1x256xf32>
    %8 = arith.mulf %7, %1 : vector<3x1x256xf32>
    %9 = arith.mulf %2, %1 : vector<3x1x256xf32>
    %10 = math.log %8 : vector<3x1x256xf32>
    %cst_8 = arith.constant -1.000000e+02 : f32
    %11 = vector.broadcast %cst_8 : f32 to vector<3x1x256xf32>
    %12 = arith.maximumf %10, %11 : vector<3x1x256xf32>
    %cst_9 = arith.constant 1.000000e+00 : f32
    %13 = vector.broadcast %cst_9 : f32 to vector<3x1x256xf32>
    %14 = arith.subf %13, %8 : vector<3x1x256xf32>
    %15 = math.log %14 : vector<3x1x256xf32>
    %cst_10 = arith.constant -1.000000e+02 : f32
    %16 = vector.broadcast %cst_10 : f32 to vector<3x1x256xf32>
    %17 = arith.maximumf %15, %16 : vector<3x1x256xf32>
    %18 = arith.mulf %9, %12 : vector<3x1x256xf32>
    %cst_11 = arith.constant 1.000000e+00 : f32
    %19 = vector.broadcast %cst_11 : f32 to vector<3x1x256xf32>
    %20 = arith.subf %19, %9 : vector<3x1x256xf32>
    %21 = arith.mulf %20, %17 : vector<3x1x256xf32>
    %22 = arith.addf %18, %21 : vector<3x1x256xf32>
    %cst_12 = arith.constant 0.000000e+00 : f32
    %23 = vector.broadcast %cst_12 : f32 to vector<3x1x256xf32>
    %24 = arith.subf %23, %22 : vector<3x1x256xf32>
    %25 = vector.shape_cast %24 : vector<3x1x256xf32> to vector<1x3x1x256xf32>
    %cst_13 = arith.constant dense<0.000000e+00> : vector<1xf32>
    %26 = vector.multi_reduction <add>, %25, %cst_13 [1, 2, 3] : vector<1x3x1x256xf32> to vector<1xf32>
    %27 = vector.shape_cast %26 : vector<1xf32> to vector<1x1x1x1xf32>
    %28 = vector.extract %27[0, 0, 0, 0] : f32 from vector<1x1x1x1xf32>
    %29 = arith.subf %8, %9 : vector<3x1x256xf32>
    %30 = arith.mulf %29, %29 : vector<3x1x256xf32>
    %31 = vector.shape_cast %30 : vector<3x1x256xf32> to vector<1x3x1x256xf32>
    %cst_14 = arith.constant dense<0.000000e+00> : vector<1xf32>
    %32 = vector.multi_reduction <add>, %31, %cst_14 [1, 2, 3] : vector<1x3x1x256xf32> to vector<1xf32>
    %33 = vector.shape_cast %32 : vector<1xf32> to vector<1x1x1x1xf32>
    %34 = vector.extract %33[0, 0, 0, 0] : f32 from vector<1x1x1x1xf32>
    %35 = tpu.iota {dimensions = array<i32: 1>} : vector<1x128xi32>
    %c0_i32 = arith.constant 0 : i32
    %36 = vector.broadcast %c0_i32 : i32 to vector<1x128xi32>
    %37 = arith.cmpi eq, %35, %36 : vector<1x128xi32>
    %c1_i32 = arith.constant 1 : i32
    %38 = vector.broadcast %c1_i32 : i32 to vector<1x128xi32>
    %39 = arith.cmpi eq, %35, %38 : vector<1x128xi32>
    %cst_15 = arith.constant 0.000000e+00 : f32
    %40 = vector.broadcast %34 : f32 to vector<1x128xf32>
    %41 = vector.broadcast %cst_15 : f32 to vector<1x128xf32>
    %42 = arith.select %39, %40, %41 : vector<1x128xi1>, vector<1x128xf32>
    %43 = vector.broadcast %28 : f32 to vector<1x128xf32>
    %44 = arith.select %37, %43, %42 : vector<1x128xi1>, vector<1x128xf32>
    %c0_16 = arith.constant 0 : index
    %c0_17 = arith.constant 0 : index
    %c0_18 = arith.constant 0 : index
    %45 = vector.load %arg4[%c0_16, %c0_17, %c0_18] : memref<1x1x128xf32, #tpu.memory_space<vmem>>, vector<1x1x128xf32>
    %46 = vector.shape_cast %45 : vector<1x1x128xf32> to vector<1x128xf32>
    %47 = vector.shape_cast %44 : vector<1x128xf32> to vector<1x1x128xf32>
    tpu.vector_store %arg4[%c0_16, %c0_17, %c0_18], %47 {strides = array<i32>} : memref<1x1x128xf32, #tpu.memory_space<vmem>>, vector<1x1x128xf32>,
    return
  }
  func.func @transform_0(%arg0: i32) -> (i32, i32, i32) {
    %c0_i32 = arith.constant 0 : i32
    %c0_i32_0 = arith.constant 0 : i32
    %c0_i32_1 = arith.constant 0 : i32
    return %arg0, %c0_i32, %c0_i32_0 : i32, i32, i32
  }
  func.func @transform_1(%arg0: i32) -> (i32, i32, i32) {
    %c0_i32 = arith.constant 0 : i32
    %c0_i32_0 = arith.constant 0 : i32
    %c0_i32_1 = arith.constant 0 : i32
    return %arg0, %c0_i32, %c0_i32_0 : i32, i32, i32
  }
  func.func @transform_2(%arg0: i32) -> (i32, i32, i32) {
    %c0_i32 = arith.constant 0 : i32
    %c0_i32_0 = arith.constant 0 : i32
    %c0_i32_1 = arith.constant 0 : i32
    return %arg0, %c0_i32, %c0_i32_0 : i32, i32, i32
  }
  func.func @transform_3(%arg0: i32) -> (i32, i32, i32) {
    %c0_i32 = arith.constant 0 : i32
    %c0_i32_0 = arith.constant 0 : i32
    %c0_i32_1 = arith.constant 0 : i32
    return %arg0, %c0_i32, %c0_i32_0 : i32, i32, i32
  }
}

</mosaic_0001>

<bundles_post_ra>
// kernel: mul.90
= control target key start
LH: loop header
LB: loop body
LE: loop exit
PB: predicated region body
PF: predicated region fallthrough
CT: control target
= control target key end

     0   :  { %s34_s0 = inlined_call_operand.vmem [shape: f32[8], index: 0, kind: input, shape index: {}, may-alias: {0,1}]   ;;  %s35_s1 = inlined_call_operand.vmem [shape: f32[8], index: 1, kind: input, shape index: {}, may-alias: {0,1}]   ;;  %s36_s2 = inlined_call_operand.vmem [shape: f32[8], index: 2, kind: output, shape index: {}]  }
   0x1   :  { %v3_v0 = vld [vmem:[%s34_s0] sm:$0x1] }
   0x2   :  { %v4_v1 = vld [vmem:[%s35_s1] sm:$0x1] }
   0x3   :  { %v7_v2 = vmul.f32 %v4_v1, %v3_v0 }
   0x5   :  { %9 = vst [vmem:[%s36_s2] sm:$0x1] %v7_v2 }

// kernel: _forward.11
= control target key start
LH: loop header
LB: loop body
LE: loop exit
PB: predicated region body
PF: predicated region fallthrough
CT: control target
= control target key end

     0   :  { %s453_s12 = smov 0   ;;  %s486_s0 = inlined_call_operand.vmem [shape: f32[6,1,16], index: 0, kind: input, shape index: {}]   ;;  %s487_s1 = inlined_call_operand.vmem [shape: f32[6,1,16], index: 1, kind: input, shape index: {}]   ;;  %s488_s2 = inlined_call_operand.vmem [shape: f32[6,1,16], index: 2, kind: input, shape index: {}]   ;;  %s489_s3 = inlined_call_operand.vmem [shape: f32[2,1,128], index: 3, kind: output, shape index: {}]  }
   0x1 LB: > { %s459_s13 = sadd.s32 4294967295, %s431_s12   ;;  %p383_p0 = scmp.ge.s32.totalorder %s431_s12, 1  ;;  %s431_s12 = sphi %s453_s12, %s13_s12  }
   0x2   : > { %p157_p1 = scmp.lt.s32.totalorder %s431_s12, 3 }
   0x4   : > { %p158_p2 = pnand %p383_p0, %p157_p1 }
   0x5   : > { %s186_s14 = smul.u32 (!%p158_p2), 3, %s459_s13  ;;  %vm273_vm0 = vcmask (!%p158_p2), 122880   ;;  %p201_p4 = scmp.lt.s32.totalorder (!%p158_p2), %s459_s13, 1 }
   0x6   : > { %161 = sbr.rel (%p158_p2) target bundleno = 286 (0x11e), region = 32 }
   0x7   : > { %p187_p3 = scmp.lt.s32.totalorder (!%p158_p2), %s186_s14, 5 }
   0xd   : > { %s491_s14 = smov (!%p187_p3, %s186_s14), 5  ;;  %s493_s13 = smov (!%p201_p4, %s459_s13), 1 }
   0xe   : > { %s189_s17 = scalar_lea.vmem %s486_s0, %s491_s14  ;;  %s194_s20 = scalar_lea.vmem %s487_s1, %s491_s14 }
   0xf   : > { %v204_v0 = vld [vmem:[%s189_s17] sm:$0x1]  ;;  %v205_v1 = vld [vmem:[%s189_s17 + $0x1] sm:$0x1]  ;;  %v206_v2 = vld [vmem:[%s189_s17 + $0x2] sm:$0x1]  ;;  %s199_s23 = scalar_lea.vmem %s488_s2, %s491_s14  ;;  %s203_s28 = scalar_lea.vmem %s489_s3, %s493_s13 }
  0x10   : > { %v384_v3 = vmul.f32 -1.442695, %v204_v0  ;;  %v385_v4 = vmul.f32 -1.442695, %v205_v1  ;;  %v386_v5 = vmul.f32 -1.442695, %v206_v2 }
  0x11   : > { %v207_v12 = vld [vmem:[%s194_s20] sm:$0x1]  ;;  %v208_v13 = vld [vmem:[%s194_s20 + $0x1] sm:$0x1]  ;;  %v209_v15 = vld [vmem:[%s194_s20 + $0x2] sm:$0x1] }
  0x12   : > { %401 = vpow2.f32 %v384_v3  ;;  %v210_v24 = vld [vmem:[%s199_s23] sm:$0x1]  ;;  %v211_v25 = vld [vmem:[%s199_s23 + $0x1] sm:$0x1]  ;;  %v212_v26 = vld [vmem:[%s199_s23 + $0x2] sm:$0x1] }
  0x13   : > { %403 = vpow2.f32 %v385_v4  ;;  %v234_v28 = vmul.f32 %v210_v24, %v207_v12  ;;  %v235_v29 = vmul.f32 %v211_v25, %v208_v13  ;;  %v236_v33 = vmul.f32 %v212_v26, %v209_v15 }
  0x14   : > { %405 = vpow2.f32 %v386_v5 }
  0x15   : > { %v261_v41 = vsub.f32 1.0, %v234_v28  ;;  %v262_v42 = vsub.f32 1.0, %v235_v29  ;;  %v263_v51 = vsub.f32 1.0, %v236_v33 }
  0x1c   : > { %v402_v6 = vpop.eup %401 }
  0x1d   : > { %v404_v7 = vpop.eup %403  ;;  %v222_v8 = vadd.f32 1.0, %v402_v6 }
  0x1e   : > { %v406_v9 = vpop.eup %405  ;;  %v223_v10 = vadd.f32 1.0, %v404_v7 }
  0x1f   : > { %v224_v11 = vadd.f32 1.0, %v406_v9  ;;  %407 = vrcp.f32 %v222_v8 }
  0x20   : > { %409 = vrcp.f32 %v223_v10 }
  0x21   : > { %411 = vrcp.f32 %v224_v11 }
  0x29   : > { %v408_v14 = vpop.eup %407 }
  0x2a   : > { %v410_v16 = vpop.eup %409  ;;  %v231_v17 = vmul.f32 %v408_v14, %v207_v12 }
  0x2b   : > { %v412_v18 = vpop.eup %411  ;;  %v232_v19 = vmul.f32 %v410_v16, %v208_v13 }
  0x2c   : > { %v233_v20 = vmul.f32 %v412_v18, %v209_v15  ;;  %413 = vlog2.f32 %v231_v17  ;;  %v246_v21 = vsub.f32 1.0, %v231_v17  ;;  %v288_v46 = vsub.f32 %v231_v17, %v234_v28 }
  0x2d   : > { %415 = vlog2.f32 %v232_v19  ;;  %v247_v22 = vsub.f32 1.0, %v232_v19  ;;  %v289_v47 = vsub.f32 %v232_v19, %v235_v29 }
  0x2e   : > { %417 = vlog2.f32 %v233_v20  ;;  %v248_v23 = vsub.f32 1.0, %v233_v20  ;;  %v290_v58 = vsub.f32 %v233_v20, %v236_v33  ;;  %v291_v59 = vmul.f32 %v288_v46, %v288_v46 }
  0x2f   : > { %419 = vlog2.f32 %v246_v21  ;;  %v292_v60 = vmul.f32 %v289_v47, %v289_v47 }
  0x30   : > { %421 = vlog2.f32 %v247_v22  ;;  %v293_v3 = vmul.f32 %v290_v58, %v290_v58  ;;  %v294_v4 = vsel %vm273_vm0, %v291_v59, 0.0 }
  0x31   : > { %423 = vlog2.f32 %v248_v23  ;;  %v295_v5 = vsel %vm273_vm0, %v292_v60, 0.0 }
  0x32   : > { %v296_v11 = vadd.f32 %v295_v5, %v294_v4  ;;  %v297_v12 = vsel %vm273_vm0, %v293_v3, 0.0 }
  0x34   : > { %v298_v14 = vadd.f32 %v297_v12, %v296_v11 }
  0x36   : > { %v414_v27 = vpop.eup %413 }
  0x37   : > { %v416_v30 = vpop.eup %415  ;;  %v238_v31 = vmul.f32 0.6931472, %v414_v27 }
  0x38   : > { %v418_v32 = vpop.eup %417  ;;  %v240_v34 = vmul.f32 0.6931472, %v416_v30 }
  0x39   : > { %v420_v35 = vpop.eup %419  ;;  %v242_v36 = vmul.f32 0.6931472, %v418_v32  ;;  %v243_v37 = vmax.f32 %v238_v31, -100.0 }
  0x3a   : > { %v422_v38 = vpop.eup %421  ;;  %v244_v39 = vmax.f32 %v240_v34, -100.0  ;;  %v250_v40 = vmul.f32 0.6931472, %v420_v35 }
  0x3b   : > { %v424_v43 = vpop.eup %423  ;;  %v245_v44 = vmax.f32 %v242_v36, -100.0  ;;  %v252_v45 = vmul.f32 0.6931472, %v422_v38  ;;  %v258_v50 = vmul.f32 %v243_v37, %v234_v28 }
  0x3c   : > { %v254_v48 = vmul.f32 0.6931472, %v424_v43  ;;  %v255_v49 = vmax.f32 %v250_v40, -100.0  ;;  %v259_v53 = vmul.f32 %v244_v39, %v235_v29  ;;  %v308_v29 = vlaneseq }
  0x3d   : > { %v256_v52 = vmax.f32 %v252_v45, -100.0  ;;  %v260_v55 = vmul.f32 %v245_v44, %v236_v33 }
  0x3e   : > { %v257_v54 = vmax.f32 %v254_v48, -100.0  ;;  %v264_v56 = vmul.f32 %v261_v41, %v255_v49  ;;  %v309_v30 = vand.u32 127, %v308_v29 }
  0x3f   : > { %v265_v57 = vmul.f32 %v262_v42, %v256_v52 }
  0x40   : > { %v266_v61 = vmul.f32 %v263_v51, %v257_v54  ;;  %v267_v62 = vadd.f32 %v264_v56, %v258_v50  ;;  %vm311_vm1 = vcmp.eq.s32.totalorder %v309_v30, 1  ;;  %vm310_vm2 = vcmp.eq.s32.totalorder %v309_v30, 0 }
  0x41   : > { %v268_v63 = vadd.f32 %v265_v57, %v259_v53 }
  0x42   : > { %v269_v0 = vadd.f32 %v266_v61, %v260_v55  ;;  %v270_v1 = vsub.f32 0.0, %v267_v62 }
  0x43   : > { %v271_v2 = vsub.f32 0.0, %v268_v63 }
  0x44   : > { %v272_v6 = vsub.f32 0.0, %v269_v0  ;;  %v274_v7 = vsel %vm273_vm0, %v270_v1, 0.0 }
  0x45   : > { %v275_v8 = vsel %vm273_vm0, %v271_v2, 0.0 }
  0x46   : > { %v276_v9 = vadd.f32 %v275_v8, %v274_v7  ;;  %v277_v10 = vsel %vm273_vm0, %v272_v6, 0.0 }
  0x48   : > { %v278_v13 = vadd.f32 %v277_v10, %v276_v9 }
  0x4a   : > { %279 = vadd.xlane.f32.xlu0 %v278_v13 }
  0x4e   : > { %299 = vadd.xlane.f32.xlu0 %v298_v14 }
  0xd7   : > { %v280_v15 = vpop.xlane.xlu0 %279 }
  0xd8   : > { %v281_v16 = vrot.slane %v280_v15, 4 }
  0xda   : > { %v282_v17 = vadd.f32 %v281_v16, %v280_v15 }
  0xdb   : > { %v300_v18 = vpop.xlane.xlu0 %299 }
  0xdc   : > { %v283_v19 = vrot.slane %v282_v17, 2  ;;  %v301_v20 = vrot.slane %v300_v18, 4 }
  0xde   : > { %v302_v21 = vadd.f32 %v301_v20, %v300_v18  ;;  %v284_v22 = vadd.f32 %v283_v19, %v282_v17 }
  0xe0   : > { %v303_v23 = vrot.slane %v302_v21, 2  ;;  %v285_v24 = vrot.slane %v284_v22, 1 }
  0xe2   : > { %v304_v25 = vadd.f32 %v303_v23, %v302_v21  ;;  %v286_v26 = vadd.f32 %v285_v24, %v284_v22 }
  0xe4   : > { %389 = vpush %v286_v26  ;;  %v305_v27 = vrot.slane %v304_v25, 1 }
  0xe6   : > { %v306_v28 = vadd.f32 %v305_v27, %v304_v25 }
  0xe8   : > { %391 = vpush %v306_v28 }
 0x115   : > { %s390_s24 = spop %389 }
 0x116   : > { %v314_v32 = vstv %s390_s24 }
 0x119   : > { %s392_s25 = spop %391 }
 0x11a   : > { %v312_v31 = vstv %s392_s25 }
 0x11b   : > { %v313_v33 = vsel %vm311_vm1, %v312_v31, 0.0 }
 0x11c   : > { %v315_v34 = vsel %vm310_vm2, %v314_v32, %v313_v33 }
 0x11d   : > { %316 = vst [vmem:[%s203_s28] sm:$0x1] %v315_v34 }
 0x11e PF: > { %s13_s12 = sadd.s32 1, %s431_s12  }
 0x11f   : > { %p10_p5 = scmp.ge.s32.totalorder %s13_s12, 4  }
 0x121   :  { %12 = sbr.rel (!%p10_p5) target bundleno = 1 (0x1), region = 68 }

// kernel: _forward.10
= control target key start
LH: loop header
LB: loop body
LE: loop exit
PB: predicated region body
PF: predicated region fallthrough
CT: control target
= control target key end

     0   :  { %s485_s12 = smov 0   ;;  %s487_s13 = smov 0   ;;  %s545_s0 = inlined_call_operand.vmem [shape: f32[6,16,16], index: 0, kind: input, shape index: {}]   ;;  %s546_s1 = inlined_call_operand.vmem [shape: f32[2,16], index: 1, kind: input, shape index: {}]   ;;  %s547_s2 = inlined_call_operand.vmem [shape: f32[6,2,1], index: 2, kind: input, shape index: {}]   ;;  %s548_s3 = inlined_call_operand.vmem [shape: f32[6,4,16], index: 3, kind: output, shape index: {}]  }
   0x1   :  { %s489_s14 = smov 0  }
   0x2 LB: > { %s376_s15 = sadd.s32 4294967295, %s462_s14   ;;  %s502_s16 = sadd.s32 1, %s462_s14   ;;  %s462_s14 = sphi %s489_s14, %s551_s14   ;;  %s458_s13 = sphi %s487_s13, %s550_s13   ;;  %s454_s12 = sphi %s485_s12, %s549_s12  }
   0x3   : > { %s17_s17 = ssub.s32 %s462_s14, %s502_s16  ;;  %s20_s18 = sadd.s32 1, %s458_s13 }
   0x4   : > { %p18_p0 = scmp.eq.s32.totalorder %s17_s17, 0  ;;  %p27_p1 = scmp.ne.s32.totalorder %s458_s13, %s454_s12 }
   0x5   : > { %p28_p2 = scmp.eq.s32.totalorder %s462_s14, 0  ;;  %p379_p4 = scmp.ge.s32.totalorder %s462_s14, 2 }
   0x6   : > { %s511_s19 = scalar_select %p18_p0, %s458_s13, %s20_s18  }
   0x7   : > { %p29_p3 = por %p28_p2, %p27_p1  ;;  %129 = sbr.rel (%p379_p4) target bundleno = 21 (0x15), region = 20 }
   0xe   : > { %132 = sbr.rel (!%p29_p3) target bundleno = 21 (0x15), region = 24  ;;  %s134_s20 = sand.u32 (%p29_p3), 1, %s458_s13  }
   0xf   : > { %s392_s21 = smul.u32 (%p29_p3), 48, %s462_s14 }
  0x10   : > { %s393_s22 = smul.u32 (%p29_p3), 24, %s134_s20 }
  0x11   : > { %s140_s25 = scalar_lea.vmem (%p29_p3), %s545_s0, %s392_s21 }
  0x12   : > { %v172_v0 = vld [vmem:[%s140_s25] sm:$0xff] (%p29_p3)  ;;  %v174_v1 = vld [vmem:[%s140_s25 + $0x10] sm:$0xff] (%p29_p3)  ;;  %s136_s26 = scalar_lea.vmem (%p29_p3), [#allocation2], %s393_s22 }
  0x13   : > { %v176_v2 = vld [vmem:[%s140_s25 + $0x20] sm:$0xff] (%p29_p3)  ;;  %173 = vst [vmem:[%s136_s26] sm:$0xff] (%p29_p3), %v172_v0  ;;  %175 = vst [vmem:[%s136_s26 + $0x8] sm:$0xff] (%p29_p3), %v174_v1 }
  0x14   : > { %177 = vst [vmem:[%s136_s26 + $0x10] sm:$0xff] (%p29_p3), %v176_v2 }
  0x15 PF: > { %p382_p5 = scmp.ge.s32.totalorder %s462_s14, 1  ;;  %p191_p6 = scmp.lt.s32.totalorder %s462_s14, 3 }
  0x17   : > { %p192_p7 = pnand %p382_p5, %p191_p6 }
  0x18   : > { %s227_s27 = smul.u32 (!%p192_p7), 3, %s376_s15  ;;  %v464_v3 = vmov (!%p192_p7), 0   ;;  %s198_s28 = sand.u32 (!%p192_p7), 1, %s454_s12   ;;  %v242_v19 = vld [vmem:[%s546_s1] sm:$0x3] (!%p192_p7)  ;;  %vm267_vm0 = vcmask (!%p192_p7), 123904  }
  0x19   : > { %195 = sbr.rel (%p192_p7) target bundleno = 173 (0xad), region = 66  ;;  %420 = vset.pattern.permute.xlu0 (!%p192_p7), %v464_v3  ;;  %421 = vset.pattern.permute.xlu1 (!%p192_p7), %v464_v3  ;;  %vm298_vm1 = vcmask (!%p192_p7), 125954  }
  0x1a   : > { %p228_p8 = scmp.lt.s32.totalorder (!%p192_p7), %s227_s27, 5  ;;  %s394_s29 = smul.u32 (!%p192_p7), 24, %s198_s28 }
  0x1c   : > { %s200_s4 = scalar_lea.vmem (!%p192_p7), [#allocation2], %s394_s29 }
  0x1d   : > { %v239_v4 = vld [vmem:[%s200_s4] sm:$0xff] (!%p192_p7)  ;;  %v241_v5 = vld [vmem:[%s200_s4 + $0x10] sm:$0xff] (!%p192_p7)  ;;  %v240_v6 = vld [vmem:[%s200_s4 + $0x8] sm:$0xff] (!%p192_p7) }
  0x1e   : > { %v385_v7 = vmul.f32 (!%p192_p7), -1.442695, %v239_v4  ;;  %v387_v8 = vmul.f32 (!%p192_p7), -1.442695, %v241_v5  ;;  %v386_v11 = vmul.f32 (!%p192_p7), -1.442695, %v240_v6 }
  0x1f   : > { %v271_v26 = vmul.f32 (!%p192_p7), 1.442695, %v239_v4  ;;  %v275_v27 = vmul.f32 (!%p192_p7), 1.442695, %v241_v5  ;;  %v273_v28 = vmul.f32 (!%p192_p7), 1.442695, %v240_v6 }
  0x20   : > { %s553_s27 = smov (!%p228_p8, %s227_s27), 5  ;;  %422 = vpow2.f32 %v385_v7 }
  0x21   : > { %s383_s30 = sshll.u32 %s553_s27, 1  ;;  %424 = vpow2.f32 %v387_v8  ;;  %s384_s10 = sshll.u32 %s553_s27, 2 }
  0x22   : > { %s231_s7 = scalar_lea.vmem %s547_s2, %s383_s30  ;;  %426 = vpow2.f32 %v386_v11  ;;  %s237_s14 = scalar_lea.vmem %s548_s3, %s384_s10 }
  0x23   : > { %v243_v9 = vld [vmem:[%s231_s7] sm:$0x3]  ;;  %v245_v10 = vld [vmem:[%s231_s7 + $0x4] sm:$0x3]  ;;  %v244_v12 = vld [vmem:[%s231_s7 + $0x2] sm:$0x3] }
  0x24   : > { %279 = vperm.xlu0 %420, %v243_v9   ;;  %287 = vperm.xlu1 %421, %v245_v10  }
  0x28   : > { %283 = vperm.xlu0 %420, %v244_v12  }
  0x2a   : > { %v423_v13 = vpop.eup %422 }
  0x2b   : > { %v255_v14 = vadd.f32 1.0, %v423_v13  ;;  %v425_v15 = vpop.eup %424 }
  0x2c   : > { %v257_v16 = vadd.f32 1.0, %v425_v15  ;;  %v427_v17 = vpop.eup %426 }
  0x2d   : > { %428 = vrcp.f32 %v255_v14  ;;  %v256_v18 = vadd.f32 1.0, %v427_v17 }
  0x2e   : > { %430 = vrcp.f32 %v257_v16 }
  0x2f   : > { %432 = vrcp.f32 %v256_v18 }
  0x30   : > { %434 = vpow2.f32 %v271_v26 }
  0x31   : > { %436 = vpow2.f32 %v275_v27 }
  0x32   : > { %438 = vpow2.f32 %v273_v28 }
  0x37   : > { %v429_v20 = vpop.eup %428 }
  0x38   : > { %v264_v21 = vadd.f32 %v429_v20, %v242_v19  ;;  %v431_v22 = vpop.eup %430 }
  0x39   : > { %v266_v23 = vadd.f32 %v431_v22, %v242_v19  ;;  %v433_v24 = vpop.eup %432 }
  0x3a   : > { %268 = vst.msk [vmem:[%s237_s14] sm:$0x3] %vm267_vm0, %v264_v21  ;;  %v265_v25 = vadd.f32 %v433_v24, %v242_v19  ;;  %v435_v29 = vpop.eup %434 }
  0x3b   : > { %270 = vst.msk [vmem:[%s237_s14 + $0x8] sm:$0x3] %vm267_vm0, %v266_v23  ;;  %v437_v30 = vpop.eup %436 }
  0x3c   : > { %269 = vst.msk [vmem:[%s237_s14 + $0x4] sm:$0x3] %vm267_vm0, %v265_v25  ;;  %v439_v37 = vpop.eup %438 }
  0xa3   : > { %v280_v31 = vpop.permute.xlu0 %279  ;;  %v288_v32 = vpop.permute.xlu1 %287 }
  0xa4   : > { %v289_v33 = vrot.slane %v280_v31, 6  ;;  %v291_v34 = vrot.slane %v288_v32, 6 }
  0xa6   : > { %v295_v35 = vmul.f32 %v435_v29, %v289_v33  ;;  %v297_v36 = vmul.f32 %v437_v30, %v291_v34 }
  0xa7   : > { %v284_v38 = vpop.permute.xlu0 %283 }
  0xa8   : > { %299 = vst.msk [vmem:[%s237_s14] sm:$0xc] %vm298_vm1, %v295_v35  ;;  %301 = vst.msk [vmem:[%s237_s14 + $0x8] sm:$0xc] %vm298_vm1, %v297_v36  ;;  %v290_v39 = vrot.slane %v284_v38, 6 }
  0xaa   : > { %v296_v40 = vmul.f32 %v439_v37, %v290_v39 }
  0xac   : > { %300 = vst.msk [vmem:[%s237_s14 + $0x4] sm:$0xc] %vm298_vm1, %v296_v40 }
  0xad PF: > { %p10_p9 = scmp.ge.s32.totalorder %s502_s16, 4   ;;  %s549_s12 = smov %s458_s13 }
  0xae   : > { %s550_s13 = smov %s511_s19  ;;  %s551_s14 = smov %s502_s16 }
  0xaf   :  { %12 = sbr.rel (!%p10_p9) target bundleno = 2 (0x2), region = 108 }

// kernel: _forward.8
= control target key start
LH: loop header
LB: loop body
LE: loop exit
PB: predicated region body
PF: predicated region fallthrough
CT: control target
= control target key end

     0   :  { %s485_s12 = smov 0   ;;  %s487_s13 = smov 0   ;;  %s545_s0 = inlined_call_operand.vmem [shape: f32[6,16,64], index: 0, kind: input, shape index: {}]   ;;  %s546_s1 = inlined_call_operand.vmem [shape: f32[2,64], index: 1, kind: input, shape index: {}]   ;;  %s547_s2 = inlined_call_operand.vmem [shape: f32[6,2,1], index: 2, kind: input, shape index: {}]   ;;  %s548_s3 = inlined_call_operand.vmem [shape: f32[6,4,64], index: 3, kind: output, shape index: {}]  }
   0x1   :  { %s489_s14 = smov 0  }
   0x2 LB: > { %s376_s15 = sadd.s32 4294967295, %s462_s14   ;;  %s502_s16 = sadd.s32 1, %s462_s14   ;;  %s462_s14 = sphi %s489_s14, %s551_s14   ;;  %s458_s13 = sphi %s487_s13, %s550_s13   ;;  %s454_s12 = sphi %s485_s12, %s549_s12  }
   0x3   : > { %s17_s17 = ssub.s32 %s462_s14, %s502_s16  ;;  %s20_s18 = sadd.s32 1, %s458_s13 }
   0x4   : > { %p18_p0 = scmp.eq.s32.totalorder %s17_s17, 0  ;;  %p27_p1 = scmp.ne.s32.totalorder %s458_s13, %s454_s12 }
   0x5   : > { %p28_p2 = scmp.eq.s32.totalorder %s462_s14, 0  ;;  %p379_p4 = scmp.ge.s32.totalorder %s462_s14, 2 }
   0x6   : > { %s511_s19 = scalar_select %p18_p0, %s458_s13, %s20_s18  }
   0x7   : > { %p29_p3 = por %p28_p2, %p27_p1  ;;  %129 = sbr.rel (%p379_p4) target bundleno = 21 (0x15), region = 20 }
   0xe   : > { %132 = sbr.rel (!%p29_p3) target bundleno = 21 (0x15), region = 24  ;;  %s134_s20 = sand.u32 (%p29_p3), 1, %s458_s13  }
   0xf   : > { %s392_s21 = smul.u32 (%p29_p3), 48, %s462_s14 }
  0x10   : > { %s393_s22 = smul.u32 (%p29_p3), 24, %s134_s20 }
  0x11   : > { %s140_s25 = scalar_lea.vmem (%p29_p3), %s545_s0, %s392_s21 }
  0x12   : > { %v172_v0 = vld [vmem:[%s140_s25] sm:$0xff] (%p29_p3)  ;;  %v174_v1 = vld [vmem:[%s140_s25 + $0x10] sm:$0xff] (%p29_p3)  ;;  %s136_s26 = scalar_lea.vmem (%p29_p3), [#allocation2], %s393_s22 }
  0x13   : > { %v176_v2 = vld [vmem:[%s140_s25 + $0x20] sm:$0xff] (%p29_p3)  ;;  %173 = vst [vmem:[%s136_s26] sm:$0xff] (%p29_p3), %v172_v0  ;;  %175 = vst [vmem:[%s136_s26 + $0x8] sm:$0xff] (%p29_p3), %v174_v1 }
  0x14   : > { %177 = vst [vmem:[%s136_s26 + $0x10] sm:$0xff] (%p29_p3), %v176_v2 }
  0x15 PF: > { %p382_p5 = scmp.ge.s32.totalorder %s462_s14, 1  ;;  %p191_p6 = scmp.lt.s32.totalorder %s462_s14, 3 }
  0x17   : > { %p192_p7 = pnand %p382_p5, %p191_p6 }
  0x18   : > { %s227_s27 = smul.u32 (!%p192_p7), 3, %s376_s15  ;;  %v464_v3 = vmov (!%p192_p7), 0   ;;  %s198_s28 = sand.u32 (!%p192_p7), 1, %s454_s12   ;;  %v242_v19 = vld [vmem:[%s546_s1] sm:$0x3] (!%p192_p7)  ;;  %vm267_vm0 = vcmask (!%p192_p7), 517120  }
  0x19   : > { %195 = sbr.rel (%p192_p7) target bundleno = 173 (0xad), region = 66  ;;  %420 = vset.pattern.permute.xlu0 (!%p192_p7), %v464_v3  ;;  %421 = vset.pattern.permute.xlu1 (!%p192_p7), %v464_v3  ;;  %vm298_vm1 = vcmask (!%p192_p7), 519170  }
  0x1a   : > { %p228_p8 = scmp.lt.s32.totalorder (!%p192_p7), %s227_s27, 5  ;;  %s394_s29 = smul.u32 (!%p192_p7), 24, %s198_s28 }
  0x1c   : > { %s200_s4 = scalar_lea.vmem (!%p192_p7), [#allocation2], %s394_s29 }
  0x1d   : > { %v239_v4 = vld [vmem:[%s200_s4] sm:$0xff] (!%p192_p7)  ;;  %v241_v5 = vld [vmem:[%s200_s4 + $0x10] sm:$0xff] (!%p192_p7)  ;;  %v240_v6 = vld [vmem:[%s200_s4 + $0x8] sm:$0xff] (!%p192_p7) }
  0x1e   : > { %v385_v7 = vmul.f32 (!%p192_p7), -1.442695, %v239_v4  ;;  %v387_v8 = vmul.f32 (!%p192_p7), -1.442695, %v241_v5  ;;  %v386_v11 = vmul.f32 (!%p192_p7), -1.442695, %v240_v6 }
  0x1f   : > { %v271_v26 = vmul.f32 (!%p192_p7), 1.442695, %v239_v4  ;;  %v275_v27 = vmul.f32 (!%p192_p7), 1.442695, %v241_v5  ;;  %v273_v28 = vmul.f32 (!%p192_p7), 1.442695, %v240_v6 }
  0x20   : > { %s553_s27 = smov (!%p228_p8, %s227_s27), 5  ;;  %422 = vpow2.f32 %v385_v7 }
  0x21   : > { %s383_s30 = sshll.u32 %s553_s27, 1  ;;  %424 = vpow2.f32 %v387_v8  ;;  %s384_s10 = sshll.u32 %s553_s27, 2 }
  0x22   : > { %s231_s7 = scalar_lea.vmem %s547_s2, %s383_s30  ;;  %426 = vpow2.f32 %v386_v11  ;;  %s237_s14 = scalar_lea.vmem %s548_s3, %s384_s10 }
  0x23   : > { %v243_v9 = vld [vmem:[%s231_s7] sm:$0x3]  ;;  %v245_v10 = vld [vmem:[%s231_s7 + $0x4] sm:$0x3]  ;;  %v244_v12 = vld [vmem:[%s231_s7 + $0x2] sm:$0x3] }
  0x24   : > { %279 = vperm.xlu0 %420, %v243_v9   ;;  %287 = vperm.xlu1 %421, %v245_v10  }
  0x28   : > { %283 = vperm.xlu0 %420, %v244_v12  }
  0x2a   : > { %v423_v13 = vpop.eup %422 }
  0x2b   : > { %v255_v14 = vadd.f32 1.0, %v423_v13  ;;  %v425_v15 = vpop.eup %424 }
  0x2c   : > { %v257_v16 = vadd.f32 1.0, %v425_v15  ;;  %v427_v17 = vpop.eup %426 }
  0x2d   : > { %428 = vrcp.f32 %v255_v14  ;;  %v256_v18 = vadd.f32 1.0, %v427_v17 }
  0x2e   : > { %430 = vrcp.f32 %v257_v16 }
  0x2f   : > { %432 = vrcp.f32 %v256_v18 }
  0x30   : > { %434 = vpow2.f32 %v271_v26 }
  0x31   : > { %436 = vpow2.f32 %v275_v27 }
  0x32   : > { %438 = vpow2.f32 %v273_v28 }
  0x37   : > { %v429_v20 = vpop.eup %428 }
  0x38   : > { %v264_v21 = vadd.f32 %v429_v20, %v242_v19  ;;  %v431_v22 = vpop.eup %430 }
  0x39   : > { %v266_v23 = vadd.f32 %v431_v22, %v242_v19  ;;  %v433_v24 = vpop.eup %432 }
  0x3a   : > { %268 = vst.msk [vmem:[%s237_s14] sm:$0x3] %vm267_vm0, %v264_v21  ;;  %v265_v25 = vadd.f32 %v433_v24, %v242_v19  ;;  %v435_v29 = vpop.eup %434 }
  0x3b   : > { %270 = vst.msk [vmem:[%s237_s14 + $0x8] sm:$0x3] %vm267_vm0, %v266_v23  ;;  %v437_v30 = vpop.eup %436 }
  0x3c   : > { %269 = vst.msk [vmem:[%s237_s14 + $0x4] sm:$0x3] %vm267_vm0, %v265_v25  ;;  %v439_v37 = vpop.eup %438 }
  0xa3   : > { %v280_v31 = vpop.permute.xlu0 %279  ;;  %v288_v32 = vpop.permute.xlu1 %287 }
  0xa4   : > { %v289_v33 = vrot.slane %v280_v31, 6  ;;  %v291_v34 = vrot.slane %v288_v32, 6 }
  0xa6   : > { %v295_v35 = vmul.f32 %v435_v29, %v289_v33  ;;  %v297_v36 = vmul.f32 %v437_v30, %v291_v34 }
  0xa7   : > { %v284_v38 = vpop.permute.xlu0 %283 }
  0xa8   : > { %299 = vst.msk [vmem:[%s237_s14] sm:$0xc] %vm298_vm1, %v295_v35  ;;  %301 = vst.msk [vmem:[%s237_s14 + $0x8] sm:$0xc] %vm298_vm1, %v297_v36  ;;  %v290_v39 = vrot.slane %v284_v38, 6 }
  0xaa   : > { %v296_v40 = vmul.f32 %v439_v37, %v290_v39 }
  0xac   : > { %300 = vst.msk [vmem:[%s237_s14 + $0x4] sm:$0xc] %vm298_vm1, %v296_v40 }
  0xad PF: > { %p10_p9 = scmp.ge.s32.totalorder %s502_s16, 4   ;;  %s549_s12 = smov %s458_s13 }
  0xae   : > { %s550_s13 = smov %s511_s19  ;;  %s551_s14 = smov %s502_s16 }
  0xaf   :  { %12 = sbr.rel (!%p10_p9) target bundleno = 2 (0x2), region = 108 }

// kernel: _forward.9
= control target key start
LH: loop header
LB: loop body
LE: loop exit
PB: predicated region body
PF: predicated region fallthrough
CT: control target
= control target key end

     0   :  { %s453_s12 = smov 0   ;;  %s486_s0 = inlined_call_operand.vmem [shape: f32[6,1,64], index: 0, kind: input, shape index: {}]   ;;  %s487_s1 = inlined_call_operand.vmem [shape: f32[6,1,64], index: 1, kind: input, shape index: {}]   ;;  %s488_s2 = inlined_call_operand.vmem [shape: f32[6,1,64], index: 2, kind: input, shape index: {}]   ;;  %s489_s3 = inlined_call_operand.vmem [shape: f32[2,1,128], index: 3, kind: output, shape index: {}]  }
   0x1 LB: > { %s459_s13 = sadd.s32 4294967295, %s431_s12   ;;  %p383_p0 = scmp.ge.s32.totalorder %s431_s12, 1  ;;  %s431_s12 = sphi %s453_s12, %s13_s12  }
   0x2   : > { %p157_p1 = scmp.lt.s32.totalorder %s431_s12, 3 }
   0x4   : > { %p158_p2 = pnand %p383_p0, %p157_p1 }
   0x5   : > { %s186_s14 = smul.u32 (!%p158_p2), 3, %s459_s13  ;;  %vm273_vm0 = vcmask (!%p158_p2), 516096   ;;  %p201_p4 = scmp.lt.s32.totalorder (!%p158_p2), %s459_s13, 1 }
   0x6   : > { %161 = sbr.rel (%p158_p2) target bundleno = 286 (0x11e), region = 32 }
   0x7   : > { %p187_p3 = scmp.lt.s32.totalorder (!%p158_p2), %s186_s14, 5 }
   0xd   : > { %s491_s14 = smov (!%p187_p3, %s186_s14), 5  ;;  %s493_s13 = smov (!%p201_p4, %s459_s13), 1 }
   0xe   : > { %s189_s17 = scalar_lea.vmem %s486_s0, %s491_s14  ;;  %s194_s20 = scalar_lea.vmem %s487_s1, %s491_s14 }
   0xf   : > { %v204_v0 = vld [vmem:[%s189_s17] sm:$0x1]  ;;  %v205_v1 = vld [vmem:[%s189_s17 + $0x1] sm:$0x1]  ;;  %v206_v2 = vld [vmem:[%s189_s17 + $0x2] sm:$0x1]  ;;  %s199_s23 = scalar_lea.vmem %s488_s2, %s491_s14  ;;  %s203_s28 = scalar_lea.vmem %s489_s3, %s493_s13 }
  0x10   : > { %v384_v3 = vmul.f32 -1.442695, %v204_v0  ;;  %v385_v4 = vmul.f32 -1.442695, %v205_v1  ;;  %v386_v5 = vmul.f32 -1.442695, %v206_v2 }
  0x11   : > { %v207_v12 = vld [vmem:[%s194_s20] sm:$0x1]  ;;  %v208_v13 = vld [vmem:[%s194_s20 + $0x1] sm:$0x1]  ;;  %v209_v15 = vld [vmem:[%s194_s20 + $0x2] sm:$0x1] }
  0x12   : > { %401 = vpow2.f32 %v384_v3  ;;  %v210_v24 = vld [vmem:[%s199_s23] sm:$0x1]  ;;  %v211_v25 = vld [vmem:[%s199_s23 + $0x1] sm:$0x1]  ;;  %v212_v26 = vld [vmem:[%s199_s23 + $0x2] sm:$0x1] }
  0x13   : > { %403 = vpow2.f32 %v385_v4  ;;  %v234_v28 = vmul.f32 %v210_v24, %v207_v12  ;;  %v235_v29 = vmul.f32 %v211_v25, %v208_v13  ;;  %v236_v33 = vmul.f32 %v212_v26, %v209_v15 }
  0x14   : > { %405 = vpow2.f32 %v386_v5 }
  0x15   : > { %v261_v41 = vsub.f32 1.0, %v234_v28  ;;  %v262_v42 = vsub.f32 1.0, %v235_v29  ;;  %v263_v51 = vsub.f32 1.0, %v236_v33 }
  0x1c   : > { %v402_v6 = vpop.eup %401 }
  0x1d   : > { %v404_v7 = vpop.eup %403  ;;  %v222_v8 = vadd.f32 1.0, %v402_v6 }
  0x1e   : > { %v406_v9 = vpop.eup %405  ;;  %v223_v10 = vadd.f32 1.0, %v404_v7 }
  0x1f   : > { %v224_v11 = vadd.f32 1.0, %v406_v9  ;;  %407 = vrcp.f32 %v222_v8 }
  0x20   : > { %409 = vrcp.f32 %v223_v10 }
  0x21   : > { %411 = vrcp.f32 %v224_v11 }
  0x29   : > { %v408_v14 = vpop.eup %407 }
  0x2a   : > { %v410_v16 = vpop.eup %409  ;;  %v231_v17 = vmul.f32 %v408_v14, %v207_v12 }
  0x2b   : > { %v412_v18 = vpop.eup %411  ;;  %v232_v19 = vmul.f32 %v410_v16, %v208_v13 }
  0x2c   : > { %v233_v20 = vmul.f32 %v412_v18, %v209_v15  ;;  %413 = vlog2.f32 %v231_v17  ;;  %v246_v21 = vsub.f32 1.0, %v231_v17  ;;  %v288_v46 = vsub.f32 %v231_v17, %v234_v28 }
  0x2d   : > { %415 = vlog2.f32 %v232_v19  ;;  %v247_v22 = vsub.f32 1.0, %v232_v19  ;;  %v289_v47 = vsub.f32 %v232_v19, %v235_v29 }
  0x2e   : > { %417 = vlog2.f32 %v233_v20  ;;  %v248_v23 = vsub.f32 1.0, %v233_v20  ;;  %v290_v58 = vsub.f32 %v233_v20, %v236_v33  ;;  %v291_v59 = vmul.f32 %v288_v46, %v288_v46 }
  0x2f   : > { %419 = vlog2.f32 %v246_v21  ;;  %v292_v60 = vmul.f32 %v289_v47, %v289_v47 }
  0x30   : > { %421 = vlog2.f32 %v247_v22  ;;  %v293_v3 = vmul.f32 %v290_v58, %v290_v58  ;;  %v294_v4 = vsel %vm273_vm0, %v291_v59, 0.0 }
  0x31   : > { %423 = vlog2.f32 %v248_v23  ;;  %v295_v5 = vsel %vm273_vm0, %v292_v60, 0.0 }
  0x32   : > { %v296_v11 = vadd.f32 %v295_v5, %v294_v4  ;;  %v297_v12 = vsel %vm273_vm0, %v293_v3, 0.0 }
  0x34   : > { %v298_v14 = vadd.f32 %v297_v12, %v296_v11 }
  0x36   : > { %v414_v27 = vpop.eup %413 }
  0x37   : > { %v416_v30 = vpop.eup %415  ;;  %v238_v31 = vmul.f32 0.6931472, %v414_v27 }
  0x38   : > { %v418_v32 = vpop.eup %417  ;;  %v240_v34 = vmul.f32 0.6931472, %v416_v30 }
  0x39   : > { %v420_v35 = vpop.eup %419  ;;  %v242_v36 = vmul.f32 0.6931472, %v418_v32  ;;  %v243_v37 = vmax.f32 %v238_v31, -100.0 }
  0x3a   : > { %v422_v38 = vpop.eup %421  ;;  %v244_v39 = vmax.f32 %v240_v34, -100.0  ;;  %v250_v40 = vmul.f32 0.6931472, %v420_v35 }
  0x3b   : > { %v424_v43 = vpop.eup %423  ;;  %v245_v44 = vmax.f32 %v242_v36, -100.0  ;;  %v252_v45 = vmul.f32 0.6931472, %v422_v38  ;;  %v258_v50 = vmul.f32 %v243_v37, %v234_v28 }
  0x3c   : > { %v254_v48 = vmul.f32 0.6931472, %v424_v43  ;;  %v255_v49 = vmax.f32 %v250_v40, -100.0  ;;  %v259_v53 = vmul.f32 %v244_v39, %v235_v29  ;;  %v308_v29 = vlaneseq }
  0x3d   : > { %v256_v52 = vmax.f32 %v252_v45, -100.0  ;;  %v260_v55 = vmul.f32 %v245_v44, %v236_v33 }
  0x3e   : > { %v257_v54 = vmax.f32 %v254_v48, -100.0  ;;  %v264_v56 = vmul.f32 %v261_v41, %v255_v49  ;;  %v309_v30 = vand.u32 127, %v308_v29 }
  0x3f   : > { %v265_v57 = vmul.f32 %v262_v42, %v256_v52 }
  0x40   : > { %v266_v61 = vmul.f32 %v263_v51, %v257_v54  ;;  %v267_v62 = vadd.f32 %v264_v56, %v258_v50  ;;  %vm311_vm1 = vcmp.eq.s32.totalorder %v309_v30, 1  ;;  %vm310_vm2 = vcmp.eq.s32.totalorder %v309_v30, 0 }
  0x41   : > { %v268_v63 = vadd.f32 %v265_v57, %v259_v53 }
  0x42   : > { %v269_v0 = vadd.f32 %v266_v61, %v260_v55  ;;  %v270_v1 = vsub.f32 0.0, %v267_v62 }
  0x43   : > { %v271_v2 = vsub.f32 0.0, %v268_v63 }
  0x44   : > { %v272_v6 = vsub.f32 0.0, %v269_v0  ;;  %v274_v7 = vsel %vm273_vm0, %v270_v1, 0.0 }
  0x45   : > { %v275_v8 = vsel %vm273_vm0, %v271_v2, 0.0 }
  0x46   : > { %v276_v9 = vadd.f32 %v275_v8, %v274_v7  ;;  %v277_v10 = vsel %vm273_vm0, %v272_v6, 0.0 }
  0x48   : > { %v278_v13 = vadd.f32 %v277_v10, %v276_v9 }
  0x4a   : > { %279 = vadd.xlane.f32.xlu0 %v278_v13 }
  0x4e   : > { %299 = vadd.xlane.f32.xlu0 %v298_v14 }
  0xd7   : > { %v280_v15 = vpop.xlane.xlu0 %279 }
  0xd8   : > { %v281_v16 = vrot.slane %v280_v15, 4 }
  0xda   : > { %v282_v17 = vadd.f32 %v281_v16, %v280_v15 }
  0xdb   : > { %v300_v18 = vpop.xlane.xlu0 %299 }
  0xdc   : > { %v283_v19 = vrot.slane %v282_v17, 2  ;;  %v301_v20 = vrot.slane %v300_v18, 4 }
  0xde   : > { %v302_v21 = vadd.f32 %v301_v20, %v300_v18  ;;  %v284_v22 = vadd.f32 %v283_v19, %v282_v17 }
  0xe0   : > { %v303_v23 = vrot.slane %v302_v21, 2  ;;  %v285_v24 = vrot.slane %v284_v22, 1 }
  0xe2   : > { %v304_v25 = vadd.f32 %v303_v23, %v302_v21  ;;  %v286_v26 = vadd.f32 %v285_v24, %v284_v22 }
  0xe4   : > { %389 = vpush %v286_v26  ;;  %v305_v27 = vrot.slane %v304_v25, 1 }
  0xe6   : > { %v306_v28 = vadd.f32 %v305_v27, %v304_v25 }
  0xe8   : > { %391 = vpush %v306_v28 }
 0x115   : > { %s390_s24 = spop %389 }
 0x116   : > { %v314_v32 = vstv %s390_s24 }
 0x119   : > { %s392_s25 = spop %391 }
 0x11a   : > { %v312_v31 = vstv %s392_s25 }
 0x11b   : > { %v313_v33 = vsel %vm311_vm1, %v312_v31, 0.0 }
 0x11c   : > { %v315_v34 = vsel %vm310_vm2, %v314_v32, %v313_v33 }
 0x11d   : > { %316 = vst [vmem:[%s203_s28] sm:$0x1] %v315_v34 }
 0x11e PF: > { %s13_s12 = sadd.s32 1, %s431_s12  }
 0x11f   : > { %p10_p5 = scmp.ge.s32.totalorder %s13_s12, 4  }
 0x121   :  { %12 = sbr.rel (!%p10_p5) target bundleno = 1 (0x1), region = 68 }

// kernel: _forward.6
= control target key start
LH: loop header
LB: loop body
LE: loop exit
PB: predicated region body
PF: predicated region fallthrough
CT: control target
= control target key end

     0   :  { %s566_s12 = smov 0   ;;  %s568_s13 = smov 0   ;;  %s648_s0 = inlined_call_operand.vmem [shape: f32[6,16,256], index: 0, kind: input, shape index: {}]   ;;  %s649_s1 = inlined_call_operand.vmem [shape: f32[2,256], index: 1, kind: input, shape index: {}]   ;;  %s650_s2 = inlined_call_operand.vmem [shape: f32[6,2,1], index: 2, kind: input, shape index: {}]   ;;  %s651_s3 = inlined_call_operand.vmem [shape: f32[6,4,256], index: 3, kind: output, shape index: {}]  }
   0x1   :  { %s570_s14 = smov 0  }
   0x2 LB: > { %s433_s15 = sadd.s32 4294967295, %s543_s14   ;;  %s583_s16 = sadd.s32 1, %s543_s14   ;;  %s543_s14 = sphi %s570_s14, %s654_s14   ;;  %s539_s13 = sphi %s568_s13, %s653_s13   ;;  %s535_s12 = sphi %s566_s12, %s652_s12  }
   0x3   : > { %s17_s17 = ssub.s32 %s543_s14, %s583_s16  ;;  %s20_s18 = sadd.s32 1, %s539_s13 }
   0x4   : > { %p18_p0 = scmp.eq.s32.totalorder %s17_s17, 0  ;;  %p27_p1 = scmp.ne.s32.totalorder %s539_s13, %s535_s12 }
   0x5   : > { %p28_p2 = scmp.eq.s32.totalorder %s543_s14, 0  ;;  %p436_p4 = scmp.ge.s32.totalorder %s543_s14, 2 }
   0x6   : > { %s592_s19 = scalar_select %p18_p0, %s539_s13, %s20_s18  }
   0x7   : > { %p29_p3 = por %p28_p2, %p27_p1  ;;  %129 = sbr.rel (%p436_p4) target bundleno = 22 (0x16), region = 20 }
   0xe   : > { %132 = sbr.rel (!%p29_p3) target bundleno = 22 (0x16), region = 24  ;;  %s134_s20 = sand.u32 (%p29_p3), 1, %s539_s13  }
   0xf   : > { %s455_s21 = smul.u32 (%p29_p3), 96, %s543_s14 }
  0x10   : > { %s456_s22 = smul.u32 (%p29_p3), 48, %s134_s20 }
  0x11   : > { %s140_s25 = scalar_lea.vmem (%p29_p3), %s648_s0, %s455_s21 }
  0x12   : > { %v153_v0 = vld [vmem:[%s140_s25] sm:$0xff] (%p29_p3)  ;;  %v155_v1 = vld [vmem:[%s140_s25 + $0x8] sm:$0xff] (%p29_p3)  ;;  %s136_s26 = scalar_lea.vmem (%p29_p3), [#allocation2], %s456_s22 }
  0x13   : > { %v157_v2 = vld [vmem:[%s140_s25 + $0x20] sm:$0xff] (%p29_p3)  ;;  %154 = vst [vmem:[%s136_s26] sm:$0xff] (%p29_p3), %v153_v0  ;;  %156 = vst [vmem:[%s136_s26 + $0x8] sm:$0xff] (%p29_p3), %v155_v1  ;;  %v159_v3 = vld [vmem:[%s140_s25 + $0x28] sm:$0xff] (%p29_p3) }
  0x14   : > { %158 = vst [vmem:[%s136_s26 + $0x10] sm:$0xff] (%p29_p3), %v157_v2  ;;  %v161_v4 = vld [vmem:[%s140_s25 + $0x40] sm:$0xff] (%p29_p3)  ;;  %v163_v5 = vld [vmem:[%s140_s25 + $0x48] sm:$0xff] (%p29_p3)  ;;  %160 = vst [vmem:[%s136_s26 + $0x18] sm:$0xff] (%p29_p3), %v159_v3 }
  0x15   : > { %162 = vst [vmem:[%s136_s26 + $0x20] sm:$0xff] %v161_v4  ;;  %164 = vst [vmem:[%s136_s26 + $0x28] sm:$0xff] %v163_v5 }
  0x16 PF: > { %p439_p5 = scmp.ge.s32.totalorder %s543_s14, 1  ;;  %p178_p6 = scmp.lt.s32.totalorder %s543_s14, 3 }
  0x18   : > { %p179_p7 = pnand %p439_p5, %p178_p6 }
  0x19   : > { %s215_s27 = smul.u32 (!%p179_p7), 3, %s433_s15  ;;  %v545_v6 = vmov (!%p179_p7), 0   ;;  %s185_s28 = sand.u32 (!%p179_p7), 1, %s535_s12  }
  0x1a   : > { %182 = sbr.rel (%p179_p7) target bundleno = 176 (0xb0), region = 51  ;;  %483 = vset.pattern.permute.xlu0 (!%p179_p7), %v545_v6  ;;  %484 = vset.pattern.permute.xlu1 (!%p179_p7), %v545_v6  ;;  %v449_v31 = vld.sshfl [vmem:[%s649_s1] sm:$0x33 pattern:$0x76325410] (!%p179_p7) }
  0x1b   : > { %p216_p8 = scmp.lt.s32.totalorder (!%p179_p7), %s215_s27, 5  ;;  %s457_s29 = smul.u32 (!%p179_p7), 48, %s185_s28  ;;  %v282_v35 = vcombine.high (!%p179_p7), %v449_v31, %v449_v31 }
  0x1d   : > { %s187_s4 = scalar_lea.vmem (!%p179_p7), [#allocation2], %s457_s29 }
  0x1e   : > { %v608_v7 = vld [vmem:[%s187_s4] sm:$0xff] (!%p179_p7)  ;;  %v610_v8 = vld [vmem:[%s187_s4 + $0x8] sm:$0xff] (!%p179_p7)  ;;  %v230_v18 = vld [vmem:[%s187_s4 + $0x10] sm:$0xff] (!%p179_p7) }
  0x1f   : > { %v612_v9 = vld [vmem:[%s187_s4 + $0x20] sm:$0xff] (!%p179_p7)  ;;  %v443_v10 = vmul.f32 (!%p179_p7), -1.442695, %v608_v7  ;;  %v444_v11 = vmul.f32 (!%p179_p7), -1.442695, %v610_v8  ;;  %v233_v14 = vld [vmem:[%s187_s4 + $0x28] sm:$0xff] (!%p179_p7) }
  0x20   : > { %v447_v15 = vmul.f32 (!%p179_p7), -1.442695, %v612_v9  ;;  %v448_v17 = vmul.f32 (!%p179_p7), -1.442695, %v233_v14  ;;  %v231_v19 = vld [vmem:[%s187_s4 + $0x18] sm:$0xff] (!%p179_p7) }
  0x21   : > { %s656_s27 = smov (!%p216_p8, %s215_s27), 5  ;;  %485 = vpow2.f32 %v443_v10  ;;  %v445_v20 = vmul.f32 -1.442695, %v230_v18  ;;  %v446_v21 = vmul.f32 -1.442695, %v231_v19 }
  0x22   : > { %s440_s30 = sshll.u32 %s656_s27, 1  ;;  %487 = vpow2.f32 %v444_v11  ;;  %s454_s10 = sshll.u32 %s656_s27, 3  ;;  %v306_v51 = vmul.f32 1.442695, %v608_v7  ;;  %v308_v52 = vmul.f32 1.442695, %v610_v8 }
  0x23   : > { %s219_s7 = scalar_lea.vmem %s650_s2, %s440_s30  ;;  %489 = vpow2.f32 %v447_v15  ;;  %s627_s14 = scalar_lea.vmem %s651_s3, %s454_s10  ;;  %v314_v53 = vmul.f32 1.442695, %v612_v9  ;;  %v316_v54 = vmul.f32 1.442695, %v233_v14  ;;  %v310_v55 = vmul.f32 1.442695, %v230_v18 }
  0x24   : > { %v235_v12 = vld [vmem:[%s219_s7] sm:$0x3]  ;;  %v237_v13 = vld [vmem:[%s219_s7 + $0x4] sm:$0x3]  ;;  %v236_v16 = vld [vmem:[%s219_s7 + $0x2] sm:$0x3]  ;;  %491 = vpow2.f32 %v448_v17 }
  0x25   : > { %320 = vperm.xlu0 %483, %v235_v12   ;;  %328 = vperm.xlu1 %484, %v237_v13   ;;  %493 = vpow2.f32 %v445_v20  ;;  %v312_v56 = vmul.f32 1.442695, %v231_v19 }
  0x26   : > { %495 = vpow2.f32 %v446_v21 }
  0x29   : > { %324 = vperm.xlu0 %483, %v236_v16  }
  0x2b   : > { %v486_v22 = vpop.eup %485 }
  0x2c   : > { %v488_v23 = vpop.eup %487  ;;  %v256_v24 = vadd.f32 1.0, %v486_v22 }
  0x2d   : > { %v257_v25 = vadd.f32 1.0, %v488_v23  ;;  %v490_v26 = vpop.eup %489 }
  0x2e   : > { %497 = vrcp.f32 %v256_v24  ;;  %v492_v27 = vpop.eup %491  ;;  %v260_v28 = vadd.f32 1.0, %v490_v26 }
  0x2f   : > { %499 = vrcp.f32 %v257_v25  ;;  %v261_v29 = vadd.f32 1.0, %v492_v27  ;;  %v494_v30 = vpop.eup %493 }
  0x30   : > { %501 = vrcp.f32 %v260_v28  ;;  %v496_v32 = vpop.eup %495  ;;  %v258_v33 = vadd.f32 1.0, %v494_v30 }
  0x31   : > { %503 = vrcp.f32 %v261_v29  ;;  %v259_v34 = vadd.f32 1.0, %v496_v32 }
  0x32   : > { %505 = vrcp.f32 %v258_v33 }
  0x33   : > { %507 = vrcp.f32 %v259_v34 }
  0x34   : > { %509 = vpow2.f32 %v306_v51 }
  0x35   : > { %511 = vpow2.f32 %v308_v52 }
  0x36   : > { %513 = vpow2.f32 %v314_v53 }
  0x37   : > { %515 = vpow2.f32 %v316_v54 }
  0x38   : > { %v498_v36 = vpop.eup %497  ;;  %517 = vpow2.f32 %v310_v55 }
  0x39   : > { %v500_v37 = vpop.eup %499  ;;  %v285_v38 = vadd.f32 %v498_v36, %v449_v31  ;;  %519 = vpow2.f32 %v312_v56 }
  0x3a   : > { %v286_v39 = vadd.f32 %v500_v37, %v282_v35  ;;  %v502_v40 = vpop.eup %501 }
  0x3b   : > { %v504_v42 = vpop.eup %503  ;;  %v289_v43 = vadd.f32 %v502_v40, %v449_v31 }
  0x3c   : > { %v297_v41 = vcombine.low %v285_v38, %v286_v39  ;;  %v290_v44 = vadd.f32 %v504_v42, %v282_v35  ;;  %v506_v45 = vpop.eup %505 }
  0x3d   : > { %v508_v47 = vpop.eup %507  ;;  %v287_v48 = vadd.f32 %v506_v45, %v449_v31 }
  0x3e   : > { %303 = vst [vmem:[%s627_s14] sm:$0x33] %v297_v41  ;;  %v299_v46 = vcombine.low %v289_v43, %v290_v44  ;;  %v288_v49 = vadd.f32 %v508_v47, %v282_v35  ;;  %v510_v57 = vpop.eup %509 }
  0x3f   : > { %v512_v58 = vpop.eup %511 }
  0x40   : > { %305 = vst [vmem:[%s627_s14 + $0x10] sm:$0x33] %v299_v46  ;;  %v298_v50 = vcombine.low %v287_v48, %v288_v49  ;;  %v514_v59 = vpop.eup %513 }
  0x41   : > { %v516_v60 = vpop.eup %515 }
  0x42   : > { %304 = vst [vmem:[%s627_s14 + $0x8] sm:$0x33] %v298_v50  ;;  %v518_v1 = vpop.eup %517 }
  0x43   : > { %v520_v6 = vpop.eup %519 }
  0xa4   : > { %v321_v61 = vpop.permute.xlu0 %320  ;;  %v329_v62 = vpop.permute.xlu1 %328 }
  0xa5   : > { %v330_v63 = vrot.slane %v321_v61, 6  ;;  %v332_v0 = vrot.slane %v329_v62, 6 }
  0xa7   : > { %v336_v2 = vmul.f32 %v510_v57, %v330_v63  ;;  %v337_v3 = vmul.f32 %v512_v58, %v330_v63  ;;  %v340_v4 = vmul.f32 %v514_v59, %v332_v0  ;;  %v341_v5 = vmul.f32 %v516_v60, %v332_v0 }
  0xa8   : > { %v325_v7 = vpop.permute.xlu0 %324 }
  0xa9   : > { %v348_v8 = vcombine.low %v336_v2, %v337_v3  ;;  %v350_v9 = vcombine.low %v340_v4, %v341_v5  ;;  %v331_v10 = vrot.slane %v325_v7, 6 }
  0xab   : > { %354 = vst [vmem:[%s627_s14] sm:$0xcc] %v348_v8  ;;  %356 = vst [vmem:[%s627_s14 + $0x10] sm:$0xcc] %v350_v9  ;;  %v338_v11 = vmul.f32 %v518_v1, %v331_v10  ;;  %v339_v12 = vmul.f32 %v520_v6, %v331_v10 }
  0xad   : > { %v349_v13 = vcombine.low %v338_v11, %v339_v12 }
  0xaf   : > { %355 = vst [vmem:[%s627_s14 + $0x8] sm:$0xcc] %v349_v13 }
  0xb0 PF: > { %p10_p9 = scmp.ge.s32.totalorder %s583_s16, 4   ;;  %s652_s12 = smov %s539_s13 }
  0xb1   : > { %s653_s13 = smov %s592_s19  ;;  %s654_s14 = smov %s583_s16 }
  0xb2   :  { %12 = sbr.rel (!%p10_p9) target bundleno = 2 (0x2), region = 93 }

// kernel: _forward.7
= control target key start
LH: loop header
LB: loop body
LE: loop exit
PB: predicated region body
PF: predicated region fallthrough
CT: control target
= control target key end

     0   :  { %s552_s12 = smov 0   ;;  %s610_s0 = inlined_call_operand.vmem [shape: f32[6,1,256], index: 0, kind: input, shape index: {}]   ;;  %s611_s1 = inlined_call_operand.vmem [shape: f32[6,1,256], index: 1, kind: input, shape index: {}]   ;;  %s612_s2 = inlined_call_operand.vmem [shape: f32[6,1,256], index: 2, kind: input, shape index: {}]   ;;  %s613_s3 = inlined_call_operand.vmem [shape: f32[2,1,128], index: 3, kind: output, shape index: {}]  }
   0x1 LB: > { %s558_s13 = sadd.s32 4294967295, %s530_s12   ;;  %p479_p0 = scmp.ge.s32.totalorder %s530_s12, 1  ;;  %s530_s12 = sphi %s552_s12, %s13_s12  }
   0x2   : > { %p160_p1 = scmp.lt.s32.totalorder %s530_s12, 3 }
   0x4   : > { %p161_p2 = pnand %p479_p0, %p160_p1 }
   0x5   : > { %s192_s14 = smul.u32 (!%p161_p2), 3, %s558_s13  ;;  %v285_v26 = vlaneseq (!%p161_p2)  ;;  %vm315_vm0 = vcmask (!%p161_p2), 1040384   ;;  %p210_p4 = scmp.lt.s32.totalorder (!%p161_p2), %s558_s13, 1 }
   0x6   : > { %164 = sbr.rel (%p161_p2) target bundleno = 294 (0x126), region = 32 }
   0x7   : > { %p193_p3 = scmp.lt.s32.totalorder (!%p161_p2), %s192_s14, 5  ;;  %v286_v30 = vshrl.u32 (!%p161_p2), %v285_v26, 7 }
   0x9   : > { %v573_v38 = vsub.s32 (!%p161_p2), 0, %v286_v30  ;;  %v575_v41 = vsub.s32 (!%p161_p2), 1, %v286_v30 }
   0xd   : > { %s615_s14 = smov (!%p193_p3, %s192_s14), 5  ;;  %s617_s13 = smov (!%p210_p4, %s558_s13), 1 }
   0xe   : > { %s480_s15 = sshll.u32 %s615_s14, 1  ;;  %s212_s29 = scalar_lea.vmem %s613_s3, %s617_s13 }
   0xf   : > { %s196_s18 = scalar_lea.vmem %s610_s0, %s480_s15  ;;  %s202_s21 = scalar_lea.vmem %s611_s1, %s480_s15 }
  0x10   : > { %v213_v0 = vld [vmem:[%s196_s18] sm:$0x3]  ;;  %v214_v1 = vld [vmem:[%s196_s18 + $0x2] sm:$0x3]  ;;  %v215_v2 = vld [vmem:[%s196_s18 + $0x4] sm:$0x3]  ;;  %s208_s24 = scalar_lea.vmem %s612_s2, %s480_s15 }
  0x11   : > { %v483_v3 = vmul.f32 -1.442695, %v213_v0  ;;  %v484_v4 = vmul.f32 -1.442695, %v214_v1  ;;  %v485_v5 = vmul.f32 -1.442695, %v215_v2 }
  0x12   : > { %v216_v12 = vld [vmem:[%s202_s21] sm:$0x3]  ;;  %v217_v13 = vld [vmem:[%s202_s21 + $0x2] sm:$0x3]  ;;  %v218_v15 = vld [vmem:[%s202_s21 + $0x4] sm:$0x3] }
  0x13   : > { %500 = vpow2.f32 %v483_v3  ;;  %v219_v20 = vld [vmem:[%s208_s24] sm:$0x3]  ;;  %v220_v27 = vld [vmem:[%s208_s24 + $0x2] sm:$0x3]  ;;  %v221_v31 = vld [vmem:[%s208_s24 + $0x4] sm:$0x3] }
  0x14   : > { %502 = vpow2.f32 %v484_v4  ;;  %v243_v25 = vmul.f32 %v219_v20, %v216_v12  ;;  %v244_v29 = vmul.f32 %v220_v27, %v217_v13  ;;  %v245_v36 = vmul.f32 %v221_v31, %v218_v15 }
  0x15   : > { %504 = vpow2.f32 %v485_v5 }
  0x16   : > { %v270_v50 = vsub.f32 1.0, %v243_v25  ;;  %v271_v55 = vsub.f32 1.0, %v244_v29  ;;  %v272_v56 = vsub.f32 1.0, %v245_v36 }
  0x1d   : > { %v501_v6 = vpop.eup %500 }
  0x1e   : > { %v503_v7 = vpop.eup %502  ;;  %v231_v8 = vadd.f32 1.0, %v501_v6 }
  0x1f   : > { %v505_v9 = vpop.eup %504  ;;  %v232_v10 = vadd.f32 1.0, %v503_v7 }
  0x20   : > { %v233_v11 = vadd.f32 1.0, %v505_v9  ;;  %506 = vrcp.f32 %v231_v8 }
  0x21   : > { %508 = vrcp.f32 %v232_v10 }
  0x22   : > { %510 = vrcp.f32 %v233_v11 }
  0x2a   : > { %v507_v14 = vpop.eup %506 }
  0x2b   : > { %v509_v16 = vpop.eup %508  ;;  %v240_v17 = vmul.f32 %v507_v14, %v216_v12 }
  0x2c   : > { %v511_v18 = vpop.eup %510  ;;  %v241_v19 = vmul.f32 %v509_v16, %v217_v13 }
  0x2d   : > { %v242_v21 = vmul.f32 %v511_v18, %v218_v15  ;;  %512 = vlog2.f32 %v240_v17  ;;  %v255_v22 = vsub.f32 1.0, %v240_v17  ;;  %v336_v28 = vsub.f32 %v240_v17, %v243_v25 }
  0x2e   : > { %514 = vlog2.f32 %v241_v19  ;;  %v256_v23 = vsub.f32 1.0, %v241_v19  ;;  %v337_v32 = vsub.f32 %v241_v19, %v244_v29 }
  0x2f   : > { %516 = vlog2.f32 %v242_v21  ;;  %v257_v24 = vsub.f32 1.0, %v242_v21  ;;  %v339_v33 = vmul.f32 %v336_v28, %v336_v28  ;;  %v338_v60 = vsub.f32 %v242_v21, %v245_v36 }
  0x30   : > { %518 = vlog2.f32 %v255_v22  ;;  %v340_v45 = vmul.f32 %v337_v32, %v337_v32 }
  0x31   : > { %520 = vlog2.f32 %v256_v23  ;;  %v348_v46 = vrot.slane %v339_v33, %v573_v38  ;;  %v352_v51 = vrot.slane %v339_v33, %v575_v41  ;;  %v341_v9 = vmul.f32 %v338_v60, %v338_v60 }
  0x32   : > { %522 = vlog2.f32 %v257_v24  ;;  %v356_v63 = vrot.slane %v340_v45, %v573_v38  ;;  %v360_v13 = vrot.slane %v340_v45, %v575_v41 }
  0x33   : > { %v375_v0 = vsel %vm315_vm0, %v348_v46, 0.0  ;;  %v376_v4 = vsel %vm315_vm0, %v352_v51, 0.0  ;;  %v364_v21 = vrot.slane %v341_v9, %v573_v38 }
  0x34   : > { %v377_v10 = vadd.f32 %v376_v4, %v375_v0  ;;  %v378_v14 = vsel %vm315_vm0, %v356_v63, 0.0  ;;  %v380_v27 = vsel %vm315_vm0, %v360_v13, 0.0 }
  0x36   : > { %v379_v22 = vadd.f32 %v378_v14, %v377_v10 }
  0x37   : > { %v513_v34 = vpop.eup %512 }
  0x38   : > { %v515_v35 = vpop.eup %514  ;;  %v247_v37 = vmul.f32 0.6931472, %v513_v34  ;;  %v381_v33 = vadd.f32 %v380_v27, %v379_v22 }
  0x39   : > { %v517_v39 = vpop.eup %516  ;;  %v249_v40 = vmul.f32 0.6931472, %v515_v35  ;;  %v368_v35 = vrot.slane %v341_v9, %v575_v41 }
  0x3a   : > { %v519_v42 = vpop.eup %518  ;;  %v251_v43 = vmul.f32 0.6931472, %v517_v39  ;;  %v252_v44 = vmax.f32 %v247_v37, -100.0 }
  0x3b   : > { %v521_v47 = vpop.eup %520  ;;  %v253_v48 = vmax.f32 %v249_v40, -100.0  ;;  %v259_v49 = vmul.f32 0.6931472, %v519_v42  ;;  %v384_v42 = vsel %vm315_vm0, %v368_v35, 0.0 }
  0x3c   : > { %v523_v52 = vpop.eup %522  ;;  %v254_v53 = vmax.f32 %v251_v43, -100.0  ;;  %v261_v54 = vmul.f32 0.6931472, %v521_v47  ;;  %v267_v59 = vmul.f32 %v252_v44, %v243_v25 }
  0x3d   : > { %v263_v57 = vmul.f32 0.6931472, %v523_v52  ;;  %v264_v58 = vmax.f32 %v259_v49, -100.0  ;;  %v268_v62 = vmul.f32 %v253_v48, %v244_v29 }
  0x3e   : > { %v265_v61 = vmax.f32 %v261_v54, -100.0  ;;  %v269_v2 = vmul.f32 %v254_v53, %v245_v36  ;;  %v382_v36 = vsel %vm315_vm0, %v364_v21, 0.0 }
  0x3f   : > { %v266_v1 = vmax.f32 %v263_v57, -100.0  ;;  %v273_v3 = vmul.f32 %v270_v50, %v264_v58  ;;  %v383_v40 = vadd.f32 %v382_v36, %v381_v33  ;;  %v396_v58 = vand.u32 127, %v285_v26 }
  0x40   : > { %v274_v5 = vmul.f32 %v271_v55, %v265_v61 }
  0x41   : > { %v275_v6 = vmul.f32 %v272_v56, %v266_v1  ;;  %v276_v7 = vadd.f32 %v273_v3, %v267_v59  ;;  %v385_v44 = vadd.f32 %v384_v42, %v383_v40  ;;  %vm398_vm1 = vcmp.eq.s32.totalorder %v396_v58, 1 }
  0x42   : > { %v277_v8 = vadd.f32 %v274_v5, %v268_v62  ;;  %vm397_vm2 = vcmp.eq.s32.totalorder %v396_v58, 0 }
  0x43   : > { %v278_v11 = vadd.f32 %v275_v6, %v269_v2  ;;  %v279_v12 = vsub.f32 0.0, %v276_v7 }
  0x44   : > { %v280_v15 = vsub.f32 0.0, %v277_v8 }
  0x45   : > { %v281_v16 = vsub.f32 0.0, %v278_v11  ;;  %v288_v17 = vrot.slane %v279_v12, %v573_v38  ;;  %v292_v18 = vrot.slane %v279_v12, %v575_v41 }
  0x46   : > { %v296_v19 = vrot.slane %v280_v15, %v573_v38  ;;  %v300_v20 = vrot.slane %v280_v15, %v575_v41 }
  0x47   : > { %v304_v23 = vrot.slane %v281_v16, %v573_v38  ;;  %v316_v24 = vsel %vm315_vm0, %v288_v17, 0.0  ;;  %v317_v25 = vsel %vm315_vm0, %v292_v18, 0.0  ;;  %v308_v30 = vrot.slane %v281_v16, %v575_v41 }
  0x48   : > { %v318_v28 = vadd.f32 %v317_v25, %v316_v24  ;;  %v319_v29 = vsel %vm315_vm0, %v296_v19, 0.0  ;;  %v321_v31 = vsel %vm315_vm0, %v300_v20, 0.0 }
  0x49   : > { %v323_v34 = vsel %vm315_vm0, %v304_v23, 0.0  ;;  %v325_v38 = vsel %vm315_vm0, %v308_v30, 0.0 }
  0x4a   : > { %v320_v32 = vadd.f32 %v319_v29, %v318_v28 }
  0x4c   : > { %v322_v37 = vadd.f32 %v321_v31, %v320_v32 }
  0x4e   : > { %v324_v39 = vadd.f32 %v323_v34, %v322_v37 }
  0x50   : > { %v326_v43 = vadd.f32 %v325_v38, %v324_v39 }
  0x52   : > { %327 = vadd.xlane.f32.xlu0 %v326_v43 }
  0x56   : > { %386 = vadd.xlane.f32.xlu0 %v385_v44 }
  0xdf   : > { %v328_v45 = vpop.xlane.xlu0 %327 }
  0xe0   : > { %v329_v46 = vrot.slane %v328_v45, 4 }
  0xe2   : > { %v330_v47 = vadd.f32 %v329_v46, %v328_v45 }
  0xe3   : > { %v387_v48 = vpop.xlane.xlu0 %386 }
  0xe4   : > { %v331_v41 = vrot.slane %v330_v47, 2  ;;  %v388_v49 = vrot.slane %v387_v48, 4 }
  0xe6   : > { %v389_v50 = vadd.f32 %v388_v49, %v387_v48  ;;  %v332_v51 = vadd.f32 %v331_v41, %v330_v47 }
  0xe8   : > { %v390_v52 = vrot.slane %v389_v50, 2  ;;  %v333_v53 = vrot.slane %v332_v51, 1 }
  0xea   : > { %v391_v54 = vadd.f32 %v390_v52, %v389_v50  ;;  %v334_v55 = vadd.f32 %v333_v53, %v332_v51 }
  0xec   : > { %488 = vpush %v334_v55  ;;  %v392_v56 = vrot.slane %v391_v54, 1 }
  0xee   : > { %v393_v57 = vadd.f32 %v392_v56, %v391_v54 }
  0xf0   : > { %490 = vpush %v393_v57 }
 0x11d   : > { %s489_s25 = spop %488 }
 0x11e   : > { %v401_v60 = vstv %s489_s25 }
 0x121   : > { %s491_s26 = spop %490 }
 0x122   : > { %v399_v59 = vstv %s491_s26 }
 0x123   : > { %v400_v61 = vsel %vm398_vm1, %v399_v59, 0.0 }
 0x124   : > { %v402_v62 = vsel %vm397_vm2, %v401_v60, %v400_v61 }
 0x125   : > { %403 = vst [vmem:[%s212_s29] sm:$0x1] %v402_v62 }
 0x126 PF: > { %s13_s12 = sadd.s32 1, %s530_s12  }
 0x127   : > { %p10_p5 = scmp.ge.s32.totalorder %s13_s12, 4  }
 0x129   :  { %12 = sbr.rel (!%p10_p5) target bundleno = 1 (0x1), region = 68 }

</bundles_post_ra>
